<compile_context>
chip_gen: v7x
topology: tpu7x:2x2x1
jax: 0.10.0
libtpu: 0.0.40
codegen_flags: <defaults>
</compile_context>

<pallas_src>
import math
import functools

import jax
import jax.numpy as jnp
from jax.experimental import pallas as pl
from jax.experimental.pallas import tpu as pltpu


# ----------------------------- in-kernel helpers -----------------------------

def _mm(x, w):
    # x: (M, K), w: (N, K)  ->  x @ w.T : (M, N); bf16 operands, f32 MXU accum.
    return jax.lax.dot_general(
        x, w, (((1,), (1,)), ((), ())), preferred_element_type=jnp.float32)


def _layernorm(x, w, b, eps=1e-5):
    mu = jnp.mean(x, axis=-1, keepdims=True)
    var = jnp.mean((x - mu) ** 2, axis=-1, keepdims=True)
    return (x - mu) * jax.lax.rsqrt(var + eps) * w + b


def _gelu_exact(x):
    # PyTorch activation='gelu' default is the exact (erf) GELU.
    return 0.5 * x * (1.0 + jax.lax.erf(x * (1.0 / math.sqrt(2.0))))


# --------------------------------- kernel ------------------------------------

def bert_layer_kernel(
    x_in_ref, mask_ref, pad_ref,
    wqkv_ref, bqkv_ref, wo_ref, bo_ref,
    ln1w_ref, ln1b_ref, w1_ref, b1_ref, w2_ref, b2_ref,
    ln2w_ref, ln2b_ref, wc_ref, bc_ref,
    out_ref, x_scr,
    *, nhead, emb_size):
    """One grid step = one (batch element, encoder layer) pair."""
    l = pl.program_id(1)
    num_layers = pl.num_programs(1)

    S = x_scr.shape[0]
    E = emb_size
    hd = E // nhead
    scale = 1.0 / math.sqrt(hd)

    # First layer: load the embedded input into the persistent residual scratch.
    @pl.when(l == 0)
    def _():
        x_scr[...] = x_in_ref[0].astype(jnp.float32)

    x = x_scr[...]                                                 # (S, E) f32
    mask = mask_ref[...].astype(jnp.float32) + pad_ref[0].astype(jnp.float32)

    # ---- multi-head self attention (post-LN encoder layer) ----
    # Fused QKV: single (S,E)x(E,3E) matmul, bf16 operands, f32 accumulation.
    qkv = _mm(x.astype(jnp.bfloat16), wqkv_ref[0]) + bqkv_ref[0]   # (S, 3E) f32
    q = (qkv[:, 0:E] * scale).astype(jnp.bfloat16)
    k = qkv[:, E:2 * E].astype(jnp.bfloat16)
    v = qkv[:, 2 * E:3 * E].astype(jnp.bfloat16)

    # Small static head loop; each head's output is concatenated and the output
    # projection is a single full-width matmul with Wo.
    # TODO(synk): for long sequences (S >= 256) switch to flash-style key tiling
    # instead of materializing the full (S, S) score matrix per head.
    heads = []
    for h in range(nhead):
        qh = q[:, h * hd:(h + 1) * hd]
        kh = k[:, h * hd:(h + 1) * hd]
        vh = v[:, h * hd:(h + 1) * hd]
        s = _mm(qh, kh) + mask                                     # (S, S) f32
        s = s - jnp.max(s, axis=-1, keepdims=True)
        p = jnp.exp(s)
        p = p * pl.reciprocal(jnp.sum(p, axis=-1, keepdims=True), approx=True)
        heads.append(jnp.dot(p.astype(jnp.bfloat16), vh,
                             preferred_element_type=jnp.float32))  # (S, hd)
    attn = jnp.concatenate(heads, axis=-1)                         # (S, E) f32

    attn_out = _mm(attn.astype(jnp.bfloat16), wo_ref[0]) + bo_ref[0]
    x = _layernorm(x + attn_out, ln1w_ref[0], ln1b_ref[0])

    # ---- feed-forward ----
    ff = _mm(x.astype(jnp.bfloat16), w1_ref[0]) + b1_ref[0]        # (S, F) f32
    ff = _gelu_exact(ff)
    ff = _mm(ff.astype(jnp.bfloat16), w2_ref[0]) + b2_ref[0]       # (S, E) f32
    x = _layernorm(x + ff, ln2w_ref[0], ln2b_ref[0])

    x_scr[...] = x

    # Last layer: classifier head with lane-padded output (dense stores).
    @pl.when(l == num_layers - 1)
    def _():
        logits = _mm(x.astype(jnp.bfloat16), wc_ref[...]) + bc_ref[...]
        out_ref[0] = logits.astype(out_ref.dtype)


# --------------------------------- wrapper ------------------------------------

def bert_forward(src, src_mask, src_padding_mask, params, *,
                 num_layers, nhead, emb_size, dim_feedforward,
                 num_labels, max_length):
    B, S = src.shape
    E, L, F = emb_size, num_layers, dim_feedforward
    c_pad = ((num_labels + 127) // 128) * 128      # lane-dense classifier width

    # TODO(synk): token-embedding gather stays in plain JAX (data-dependent HBM
    # gather; no rectangular BlockSpec expresses it cleanly).
    tok = jnp.take(params["emb_table"], src, axis=0) * math.sqrt(E)   # (B, S, E)
    # PositionalEncoding exactly as the reference module: pos_embedding[:B] has
    # shape (B, 1, E) and broadcasts over the sequence axis (mirrors the PyTorch
    # code verbatim, batch_first quirk included).
    pe = params["pos_embedding"][:B]                                  # (B, 1, E)
    x = (tok + pe).astype(jnp.float32)

    attn_mask = src_mask.astype(jnp.float32)                          # (S, S)
    pad_add = jnp.where(src_padding_mask, -1e9, 0.0).astype(jnp.float32)
    pad_add = pad_add.reshape(B, 1, S)

    # bf16 weights for the matmuls (halves HBM bytes and VMEM blocks); biases,
    # LN params and masks stay f32.
    wqkv = params["wqkv"].astype(jnp.bfloat16)
    wo = params["wo"].astype(jnp.bfloat16)
    w1 = params["w1"].astype(jnp.bfloat16)
    w2 = params["w2"].astype(jnp.bfloat16)
    wc = (jnp.zeros((c_pad, E), jnp.float32)
          .at[:num_labels].set(params["wc"]).astype(jnp.bfloat16))
    bc = jnp.zeros((1, c_pad), jnp.float32).at[:, :num_labels].set(params["bc"])

    # Per-layer 1D params reshaped to (L, 1, dim) so blocks keep full trailing dims.
    bqkv = params["bqkv"].reshape(L, 1, 3 * E)
    bo = params["bo"].reshape(L, 1, E)
    b1 = params["b1"].reshape(L, 1, F)
    b2 = params["b2"].reshape(L, 1, E)
    ln1w = params["ln1w"].reshape(L, 1, E)
    ln1b = params["ln1b"].reshape(L, 1, E)
    ln2w = params["ln2w"].reshape(L, 1, E)
    ln2b = params["ln2b"].reshape(L, 1, E)

    kernel = functools.partial(bert_layer_kernel, nhead=nhead, emb_size=E)

    batch3 = lambda b, l: (b, 0, 0)   # per-batch blocks (constant across layers)
    layer3 = lambda b, l: (l, 0, 0)   # per-layer weight streaming
    const2 = lambda b, l: (0, 0)      # broadcast / shared blocks

    grid_spec = pltpu.PrefetchScalarGridSpec(
        num_scalar_prefetch=0,
        grid=(B, L),
        in_specs=[
            pl.BlockSpec((1, S, E), batch3),          # embedded input
            pl.BlockSpec((S, S), const2),             # additive attention mask
            pl.BlockSpec((1, 1, S), batch3),          # key-padding additive mask
            pl.BlockSpec((1, 3 * E, E), layer3),      # in-proj W (fused QKV)
            pl.BlockSpec((1, 1, 3 * E), layer3),      # in-proj b
            pl.BlockSpec((1, E, E), layer3),          # out-proj W
            pl.BlockSpec((1, 1, E), layer3),          # out-proj b
            pl.BlockSpec((1, 1, E), layer3),          # ln1 w
            pl.BlockSpec((1, 1, E), layer3),          # ln1 b
            pl.BlockSpec((1, F, E), layer3),          # linear1 W
            pl.BlockSpec((1, 1, F), layer3),          # linear1 b
            pl.BlockSpec((1, E, F), layer3),          # linear2 W
            pl.BlockSpec((1, 1, E), layer3),          # linear2 b
            pl.BlockSpec((1, 1, E), layer3),          # ln2 w
            pl.BlockSpec((1, 1, E), layer3),          # ln2 b
            pl.BlockSpec((c_pad, E), const2),         # classifier W (lane padded)
            pl.BlockSpec((1, c_pad), const2),         # classifier b (lane padded)
        ],
        out_specs=pl.BlockSpec((1, S, c_pad), batch3),
        scratch_shapes=[pltpu.VMEM((S, E), jnp.float32)],   # residual stream
    )

    out = pl.pallas_call(
        kernel,
        out_shape=jax.ShapeDtypeStruct((B, S, c_pad), jnp.float32),
        grid_spec=grid_spec,
        compiler_params=pltpu.CompilerParams(
            dimension_semantics=("parallel", "arbitrary"),
            vmem_limit_bytes=48 * 1024 * 1024),
    )(x, attn_mask, pad_add,
      wqkv, bqkv, wo, bo, ln1w, ln1b, w1, b1, w2, b2, ln2w, ln2b, wc, bc)

    logits = out[:, :, :num_labels]                  # drop lane padding
    # output.view([-1, num_labels, max_length]) on a contiguous (B, S, C) tensor
    # is a plain row-major reshape (requires S == max_length).
    return jnp.reshape(logits, (-1, num_labels, max_length))


# ----------------------------- deterministic init -----------------------------

def init_params(key, *, vocab_size, emb_size, nhead, num_layers,
                dim_feedforward, num_labels, max_length, pad_idx=0):
    E, L, F = emb_size, num_layers, dim_feedforward
    ks = jax.random.split(key, 8)
    std = 0.02

    emb_table = std * jax.random.normal(ks[0], (vocab_size, E), jnp.float32)
    emb_table = emb_table.at[pad_idx].set(0.0)   # nn.Embedding padding_idx row

    # sinusoidal positional buffer, shape (maxlen, 1, E), as in the module
    den = jnp.exp(-jnp.arange(0, E, 2, dtype=jnp.float32) * math.log(10000.0) / E)
    pos = jnp.arange(0, max_length, dtype=jnp.float32).reshape(max_length, 1)
    pe = jnp.zeros((max_length, E), jnp.float32)
    pe = pe.at[:, 0::2].set(jnp.sin(pos * den))
    pe = pe.at[:, 1::2].set(jnp.cos(pos * den))
    pos_embedding = pe[:, None, :]

    params = dict(
        emb_table=emb_table,
        pos_embedding=pos_embedding,
        wqkv=std * jax.random.normal(ks[1], (L, 3 * E, E), jnp.float32),
        bqkv=jnp.zeros((L, 3 * E), jnp.float32),
        wo=std * jax.random.normal(ks[2], (L, E, E), jnp.float32),
        bo=jnp.zeros((L, E), jnp.float32),
        ln1w=jnp.ones((L, E), jnp.float32),
        ln1b=jnp.zeros((L, E), jnp.float32),
        w1=std * jax.random.normal(ks[3], (L, F, E), jnp.float32),
        b1=jnp.zeros((L, F), jnp.float32),
        w2=std * jax.random.normal(ks[4], (L, E, F), jnp.float32),
        b2=jnp.zeros((L, E), jnp.float32),
        ln2w=jnp.ones((L, E), jnp.float32),
        ln2b=jnp.zeros((L, E), jnp.float32),
        wc=std * jax.random.normal(ks[5], (num_labels, E), jnp.float32),
        bc=jnp.zeros((1, num_labels), jnp.float32),
    )
    return params


# ----------------------------------- main -------------------------------------

if __name__ == "__main__":
    # small shapes consistent with the module (seq == max_length required by
    # the final .view); dropout is identity (inference).
    B = 2
    S = MAX_LEN = 16
    EMB = 32
    NHEAD = 4
    FFN = 64
    VOCAB = 50
    NUM_LABELS = 7
    NUM_LAYERS = 2
    PAD_IDX = 0

    key = jax.random.PRNGKey(0)
    k_param, k_tok = jax.random.split(key)

    params = init_params(
        k_param, vocab_size=VOCAB, emb_size=EMB, nhead=NHEAD,
        num_layers=NUM_LAYERS, dim_feedforward=FFN, num_labels=NUM_LABELS,
        max_length=MAX_LEN, pad_idx=PAD_IDX)

    # token ids, with trailing padding tokens in each sequence
    src = jax.random.randint(k_tok, (B, S), 1, VOCAB, dtype=jnp.int32)
    src = src.at[:, -3:].set(PAD_IDX)
    src_mask = jnp.zeros((S, S), jnp.float32)          # additive attention mask
    src_padding_mask = (src == PAD_IDX)                # True where padded

    out = bert_forward(
        src, src_mask, src_padding_mask, params,
        num_layers=NUM_LAYERS, nhead=NHEAD, emb_size=EMB,
        dim_feedforward=FFN, num_labels=NUM_LABELS, max_length=MAX_LEN)
    out = jax.block_until_ready(out)

    assert out.shape == (B, NUM_LABELS, MAX_LEN), out.shape
    assert bool(jnp.all(jnp.isfinite(out)))
    print("KERNEL_OK")
</pallas_src>

<mosaic_0001>
module attributes {stable_mosaic.version = 11 : i64} {
  func.func @bert_layer_kernel(%arg0: i32, %arg1: i32, %arg2: memref<1x16x32xf32, #tpu.memory_space<vmem>>, %arg3: memref<16x16xf32, #tpu.memory_space<vmem>>, %arg4: memref<1x1x16xf32, #tpu.memory_space<vmem>>, %arg5: memref<1x96x32xbf16, #tpu.memory_space<vmem>>, %arg6: memref<1x1x96xf32, #tpu.memory_space<vmem>>, %arg7: memref<1x32x32xbf16, #tpu.memory_space<vmem>>, %arg8: memref<1x1x32xf32, #tpu.memory_space<vmem>>, %arg9: memref<1x1x32xf32, #tpu.memory_space<vmem>>, %arg10: memref<1x1x32xf32, #tpu.memory_space<vmem>>, %arg11: memref<1x64x32xbf16, #tpu.memory_space<vmem>>, %arg12: memref<1x1x64xf32, #tpu.memory_space<vmem>>, %arg13: memref<1x32x64xbf16, #tpu.memory_space<vmem>>, %arg14: memref<1x1x32xf32, #tpu.memory_space<vmem>>, %arg15: memref<1x1x32xf32, #tpu.memory_space<vmem>>, %arg16: memref<1x1x32xf32, #tpu.memory_space<vmem>>, %arg17: memref<128x32xbf16, #tpu.memory_space<vmem>>, %arg18: memref<1x128xf32, #tpu.memory_space<vmem>>, %arg19: memref<1x16x128xf32, #tpu.memory_space<vmem>>, %arg20: memref<16x32xf32, #tpu.memory_space<vmem>>) attributes {dimension_semantics = [#tpu.dimension_semantics<parallel>, #tpu.dimension_semantics<arbitrary>], iteration_bounds = array<i64: 2, 2>, scalar_prefetch = 0 : i64, scratch_operands = 1 : i64, tpu.core_type = #tpu.core_type<tc>, window_params = [{transform_indices = @transform_0, window_bounds = array<i64: 1, 16, 32>}, {pipeline_mode = #tpu.pipeline_mode<synchronous>, transform_indices = @transform_1, window_bounds = array<i64: 16, 16>}, {transform_indices = @transform_2, window_bounds = array<i64: 1, 1, 16>}, {transform_indices = @transform_3, window_bounds = array<i64: 1, 96, 32>}, {transform_indices = @transform_4, window_bounds = array<i64: 1, 1, 96>}, {transform_indices = @transform_5, window_bounds = array<i64: 1, 32, 32>}, {transform_indices = @transform_6, window_bounds = array<i64: 1, 1, 32>}, {transform_indices = @transform_7, window_bounds = array<i64: 1, 1, 32>}, {transform_indices = @transform_8, window_bounds = array<i64: 1, 1, 32>}, {transform_indices = @transform_9, window_bounds = array<i64: 1, 64, 32>}, {transform_indices = @transform_10, window_bounds = array<i64: 1, 1, 64>}, {transform_indices = @transform_11, window_bounds = array<i64: 1, 32, 64>}, {transform_indices = @transform_12, window_bounds = array<i64: 1, 1, 32>}, {transform_indices = @transform_13, window_bounds = array<i64: 1, 1, 32>}, {transform_indices = @transform_14, window_bounds = array<i64: 1, 1, 32>}, {pipeline_mode = #tpu.pipeline_mode<synchronous>, transform_indices = @transform_15, window_bounds = array<i64: 128, 32>}, {pipeline_mode = #tpu.pipeline_mode<synchronous>, transform_indices = @transform_16, window_bounds = array<i64: 1, 128>}, {transform_indices = @transform_17, window_bounds = array<i64: 1, 16, 128>}]} {
    %c0_i32 = arith.constant 0 : i32
    %0 = arith.cmpi eq, %arg1, %c0_i32 : i32
    %1 = arith.extui %0 : i1 to i32
    %c0_i32_0 = arith.constant 0 : i32
    %2 = arith.cmpi ne, %1, %c0_i32_0 : i32
    scf.if %2 {
      %c0_79 = arith.constant 0 : index
      %c0_80 = arith.constant 0 : index
      %c0_81 = arith.constant 0 : index
      %184 = vector.load %arg2[%c0_79, %c0_80, %c0_81] : memref<1x16x32xf32, #tpu.memory_space<vmem>>, vector<1x16x32xf32>
      %185 = vector.shape_cast %184 : vector<1x16x32xf32> to vector<16x32xf32>
      %c0_82 = arith.constant 0 : index
      %c0_83 = arith.constant 0 : index
      %186 = vector.load %arg20[%c0_82, %c0_83] : memref<16x32xf32, #tpu.memory_space<vmem>>, vector<16x32xf32>
      tpu.vector_store %arg20[%c0_82, %c0_83], %185 {strides = array<i32>} : memref<16x32xf32, #tpu.memory_space<vmem>>, vector<16x32xf32>,
    } else {
    }
    %c0 = arith.constant 0 : index
    %c0_1 = arith.constant 0 : index
    %3 = vector.load %arg20[%c0, %c0_1] : memref<16x32xf32, #tpu.memory_space<vmem>>, vector<16x32xf32>
    %c0_2 = arith.constant 0 : index
    %c0_3 = arith.constant 0 : index
    %4 = vector.load %arg3[%c0_2, %c0_3] : memref<16x16xf32, #tpu.memory_space<vmem>>, vector<16x16xf32>
    %c0_4 = arith.constant 0 : index
    %c0_5 = arith.constant 0 : index
    %c0_6 = arith.constant 0 : index
    %5 = vector.load %arg4[%c0_4, %c0_5, %c0_6] : memref<1x1x16xf32, #tpu.memory_space<vmem>>, vector<1x1x16xf32>
    %6 = vector.shape_cast %5 : vector<1x1x16xf32> to vector<1x16xf32>
    %7 = vector.broadcast %6 : vector<1x16xf32> to vector<16x16xf32>
    %8 = arith.addf %4, %7 : vector<16x16xf32>
    %9 = arith.truncf %3 : vector<16x32xf32> to vector<16x32xbf16>
    %c0_7 = arith.constant 0 : index
    %c0_8 = arith.constant 0 : index
    %c0_9 = arith.constant 0 : index
    %10 = vector.load %arg5[%c0_7, %c0_8, %c0_9] : memref<1x96x32xbf16, #tpu.memory_space<vmem>>, vector<1x96x32xbf16>
    %11 = vector.shape_cast %10 : vector<1x96x32xbf16> to vector<96x32xbf16>
    %cst = arith.constant dense<0.000000e+00> : vector<16x96xf32>
    %12 = tpu.matmul %9, %11, %cst {dimension_numbers = #tpu.dot_dimension_numbers<[1], [1], [0], [0], [0, 0, 1, 0], [], []>} : vector<16x32xbf16>, vector<96x32xbf16>, vector<16x96xf32> -> vector<16x96xf32>
    %c0_10 = arith.constant 0 : index
    %c0_11 = arith.constant 0 : index
    %c0_12 = arith.constant 0 : index
    %13 = vector.load %arg6[%c0_10, %c0_11, %c0_12] : memref<1x1x96xf32, #tpu.memory_space<vmem>>, vector<1x1x96xf32>
    %14 = vector.shape_cast %13 : vector<1x1x96xf32> to vector<1x96xf32>
    %15 = vector.broadcast %14 : vector<1x96xf32> to vector<16x96xf32>
    %16 = arith.addf %12, %15 : vector<16x96xf32>
    %17 = vector.extract_strided_slice %16 {offsets = [0, 0], sizes = [16, 32], strides = [1, 1]} : vector<16x96xf32> to vector<16x32xf32>
    %cst_13 = arith.constant 0.353553385 : f32
    %18 = vector.broadcast %cst_13 : f32 to vector<16x32xf32>
    %19 = arith.mulf %17, %18 : vector<16x32xf32>
    %20 = arith.truncf %19 : vector<16x32xf32> to vector<16x32xbf16>
    %21 = vector.extract_strided_slice %16 {offsets = [0, 32], sizes = [16, 32], strides = [1, 1]} : vector<16x96xf32> to vector<16x32xf32>
    %22 = arith.truncf %21 : vector<16x32xf32> to vector<16x32xbf16>
    %23 = vector.extract_strided_slice %16 {offsets = [0, 64], sizes = [16, 32], strides = [1, 1]} : vector<16x96xf32> to vector<16x32xf32>
    %24 = arith.truncf %23 : vector<16x32xf32> to vector<16x32xbf16>
    %25 = vector.extract_strided_slice %20 {offsets = [0, 0], sizes = [16, 8], strides = [1, 1]} : vector<16x32xbf16> to vector<16x8xbf16>
    %26 = vector.extract_strided_slice %22 {offsets = [0, 0], sizes = [16, 8], strides = [1, 1]} : vector<16x32xbf16> to vector<16x8xbf16>
    %27 = vector.extract_strided_slice %24 {offsets = [0, 0], sizes = [16, 8], strides = [1, 1]} : vector<16x32xbf16> to vector<16x8xbf16>
    %cst_14 = arith.constant dense<0.000000e+00> : vector<16x16xf32>
    %28 = tpu.matmul %25, %26, %cst_14 {dimension_numbers = #tpu.dot_dimension_numbers<[1], [1], [0], [0], [0, 0, 1, 0], [], []>} : vector<16x8xbf16>, vector<16x8xbf16>, vector<16x16xf32> -> vector<16x16xf32>
    %29 = arith.addf %28, %8 : vector<16x16xf32>
    %cst_15 = arith.constant dense<0xFF800000> : vector<16xf32>
    %30 = vector.multi_reduction <maximumf>, %29, %cst_15 [1] : vector<16x16xf32> to vector<16xf32>
    %31 = vector.shape_cast %30 : vector<16xf32> to vector<16x1xf32>
    %32 = vector.broadcast %31 : vector<16x1xf32> to vector<16x16xf32>
    %33 = arith.subf %29, %32 : vector<16x16xf32>
    %34 = math.exp %33 : vector<16x16xf32>
    %cst_16 = arith.constant dense<0.000000e+00> : vector<16xf32>
    %35 = vector.multi_reduction <add>, %34, %cst_16 [1] : vector<16x16xf32> to vector<16xf32>
    %36 = vector.shape_cast %35 : vector<16xf32> to vector<16x1xf32>
    %37 = tpu.reciprocal %36 {approx = true} : vector<16x1xf32> -> vector<16x1xf32>
    %38 = vector.broadcast %37 : vector<16x1xf32> to vector<16x16xf32>
    %39 = arith.mulf %34, %38 : vector<16x16xf32>
    %40 = arith.truncf %39 : vector<16x16xf32> to vector<16x16xbf16>
    %cst_17 = arith.constant dense<0.000000e+00> : vector<16x8xf32>
    %41 = tpu.matmul %40, %27, %cst_17 {dimension_numbers = #tpu.dot_dimension_numbers<[1], [0], [0], [1], [0, 0, 1, 1], [], []>} : vector<16x16xbf16>, vector<16x8xbf16>, vector<16x8xf32> -> vector<16x8xf32>
    %42 = vector.extract_strided_slice %20 {offsets = [0, 8], sizes = [16, 8], strides = [1, 1]} : vector<16x32xbf16> to vector<16x8xbf16>
    %43 = vector.extract_strided_slice %22 {offsets = [0, 8], sizes = [16, 8], strides = [1, 1]} : vector<16x32xbf16> to vector<16x8xbf16>
    %44 = vector.extract_strided_slice %24 {offsets = [0, 8], sizes = [16, 8], strides = [1, 1]} : vector<16x32xbf16> to vector<16x8xbf16>
    %cst_18 = arith.constant dense<0.000000e+00> : vector<16x16xf32>
    %45 = tpu.matmul %42, %43, %cst_18 {dimension_numbers = #tpu.dot_dimension_numbers<[1], [1], [0], [0], [0, 0, 1, 0], [], []>} : vector<16x8xbf16>, vector<16x8xbf16>, vector<16x16xf32> -> vector<16x16xf32>
    %46 = arith.addf %45, %8 : vector<16x16xf32>
    %cst_19 = arith.constant dense<0xFF800000> : vector<16xf32>
    %47 = vector.multi_reduction <maximumf>, %46, %cst_19 [1] : vector<16x16xf32> to vector<16xf32>
    %48 = vector.shape_cast %47 : vector<16xf32> to vector<16x1xf32>
    %49 = vector.broadcast %48 : vector<16x1xf32> to vector<16x16xf32>
    %50 = arith.subf %46, %49 : vector<16x16xf32>
    %51 = math.exp %50 : vector<16x16xf32>
    %cst_20 = arith.constant dense<0.000000e+00> : vector<16xf32>
    %52 = vector.multi_reduction <add>, %51, %cst_20 [1] : vector<16x16xf32> to vector<16xf32>
    %53 = vector.shape_cast %52 : vector<16xf32> to vector<16x1xf32>
    %54 = tpu.reciprocal %53 {approx = true} : vector<16x1xf32> -> vector<16x1xf32>
    %55 = vector.broadcast %54 : vector<16x1xf32> to vector<16x16xf32>
    %56 = arith.mulf %51, %55 : vector<16x16xf32>
    %57 = arith.truncf %56 : vector<16x16xf32> to vector<16x16xbf16>
    %cst_21 = arith.constant dense<0.000000e+00> : vector<16x8xf32>
    %58 = tpu.matmul %57, %44, %cst_21 {dimension_numbers = #tpu.dot_dimension_numbers<[1], [0], [0], [1], [0, 0, 1, 1], [], []>} : vector<16x16xbf16>, vector<16x8xbf16>, vector<16x8xf32> -> vector<16x8xf32>
    %59 = vector.extract_strided_slice %20 {offsets = [0, 16], sizes = [16, 8], strides = [1, 1]} : vector<16x32xbf16> to vector<16x8xbf16>
    %60 = vector.extract_strided_slice %22 {offsets = [0, 16], sizes = [16, 8], strides = [1, 1]} : vector<16x32xbf16> to vector<16x8xbf16>
    %61 = vector.extract_strided_slice %24 {offsets = [0, 16], sizes = [16, 8], strides = [1, 1]} : vector<16x32xbf16> to vector<16x8xbf16>
    %cst_22 = arith.constant dense<0.000000e+00> : vector<16x16xf32>
    %62 = tpu.matmul %59, %60, %cst_22 {dimension_numbers = #tpu.dot_dimension_numbers<[1], [1], [0], [0], [0, 0, 1, 0], [], []>} : vector<16x8xbf16>, vector<16x8xbf16>, vector<16x16xf32> -> vector<16x16xf32>
    %63 = arith.addf %62, %8 : vector<16x16xf32>
    %cst_23 = arith.constant dense<0xFF800000> : vector<16xf32>
    %64 = vector.multi_reduction <maximumf>, %63, %cst_23 [1] : vector<16x16xf32> to vector<16xf32>
    %65 = vector.shape_cast %64 : vector<16xf32> to vector<16x1xf32>
    %66 = vector.broadcast %65 : vector<16x1xf32> to vector<16x16xf32>
    %67 = arith.subf %63, %66 : vector<16x16xf32>
    %68 = math.exp %67 : vector<16x16xf32>
    %cst_24 = arith.constant dense<0.000000e+00> : vector<16xf32>
    %69 = vector.multi_reduction <add>, %68, %cst_24 [1] : vector<16x16xf32> to vector<16xf32>
    %70 = vector.shape_cast %69 : vector<16xf32> to vector<16x1xf32>
    %71 = tpu.reciprocal %70 {approx = true} : vector<16x1xf32> -> vector<16x1xf32>
    %72 = vector.broadcast %71 : vector<16x1xf32> to vector<16x16xf32>
    %73 = arith.mulf %68, %72 : vector<16x16xf32>
    %74 = arith.truncf %73 : vector<16x16xf32> to vector<16x16xbf16>
    %cst_25 = arith.constant dense<0.000000e+00> : vector<16x8xf32>
    %75 = tpu.matmul %74, %61, %cst_25 {dimension_numbers = #tpu.dot_dimension_numbers<[1], [0], [0], [1], [0, 0, 1, 1], [], []>} : vector<16x16xbf16>, vector<16x8xbf16>, vector<16x8xf32> -> vector<16x8xf32>
    %76 = vector.extract_strided_slice %20 {offsets = [0, 24], sizes = [16, 8], strides = [1, 1]} : vector<16x32xbf16> to vector<16x8xbf16>
    %77 = vector.extract_strided_slice %22 {offsets = [0, 24], sizes = [16, 8], strides = [1, 1]} : vector<16x32xbf16> to vector<16x8xbf16>
    %78 = vector.extract_strided_slice %24 {offsets = [0, 24], sizes = [16, 8], strides = [1, 1]} : vector<16x32xbf16> to vector<16x8xbf16>
    %cst_26 = arith.constant dense<0.000000e+00> : vector<16x16xf32>
    %79 = tpu.matmul %76, %77, %cst_26 {dimension_numbers = #tpu.dot_dimension_numbers<[1], [1], [0], [0], [0, 0, 1, 0], [], []>} : vector<16x8xbf16>, vector<16x8xbf16>, vector<16x16xf32> -> vector<16x16xf32>
    %80 = arith.addf %79, %8 : vector<16x16xf32>
    %cst_27 = arith.constant dense<0xFF800000> : vector<16xf32>
    %81 = vector.multi_reduction <maximumf>, %80, %cst_27 [1] : vector<16x16xf32> to vector<16xf32>
    %82 = vector.shape_cast %81 : vector<16xf32> to vector<16x1xf32>
    %83 = vector.broadcast %82 : vector<16x1xf32> to vector<16x16xf32>
    %84 = arith.subf %80, %83 : vector<16x16xf32>
    %85 = math.exp %84 : vector<16x16xf32>
    %cst_28 = arith.constant dense<0.000000e+00> : vector<16xf32>
    %86 = vector.multi_reduction <add>, %85, %cst_28 [1] : vector<16x16xf32> to vector<16xf32>
    %87 = vector.shape_cast %86 : vector<16xf32> to vector<16x1xf32>
    %88 = tpu.reciprocal %87 {approx = true} : vector<16x1xf32> -> vector<16x1xf32>
    %89 = vector.broadcast %88 : vector<16x1xf32> to vector<16x16xf32>
    %90 = arith.mulf %85, %89 : vector<16x16xf32>
    %91 = arith.truncf %90 : vector<16x16xf32> to vector<16x16xbf16>
    %cst_29 = arith.constant dense<0.000000e+00> : vector<16x8xf32>
    %92 = tpu.matmul %91, %78, %cst_29 {dimension_numbers = #tpu.dot_dimension_numbers<[1], [0], [0], [1], [0, 0, 1, 1], [], []>} : vector<16x16xbf16>, vector<16x8xbf16>, vector<16x8xf32> -> vector<16x8xf32>
    %93 = tpu.concatenate %41, %58, %75, %92 in 1 : vector<16x8xf32>, vector<16x8xf32>, vector<16x8xf32>, vector<16x8xf32> -> vector<16x32xf32>
    %94 = arith.truncf %93 : vector<16x32xf32> to vector<16x32xbf16>
    %c0_30 = arith.constant 0 : index
    %c0_31 = arith.constant 0 : index
    %c0_32 = arith.constant 0 : index
    %95 = vector.load %arg7[%c0_30, %c0_31, %c0_32] : memref<1x32x32xbf16, #tpu.memory_space<vmem>>, vector<1x32x32xbf16>
    %96 = vector.shape_cast %95 : vector<1x32x32xbf16> to vector<32x32xbf16>
    %cst_33 = arith.constant dense<0.000000e+00> : vector<16x32xf32>
    %97 = tpu.matmul %94, %96, %cst_33 {dimension_numbers = #tpu.dot_dimension_numbers<[1], [1], [0], [0], [0, 0, 1, 0], [], []>} : vector<16x32xbf16>, vector<32x32xbf16>, vector<16x32xf32> -> vector<16x32xf32>
    %c0_34 = arith.constant 0 : index
    %c0_35 = arith.constant 0 : index
    %c0_36 = arith.constant 0 : index
    %98 = vector.load %arg8[%c0_34, %c0_35, %c0_36] : memref<1x1x32xf32, #tpu.memory_space<vmem>>, vector<1x1x32xf32>
    %99 = vector.shape_cast %98 : vector<1x1x32xf32> to vector<1x32xf32>
    %100 = vector.broadcast %99 : vector<1x32xf32> to vector<16x32xf32>
    %101 = arith.addf %97, %100 : vector<16x32xf32>
    %102 = arith.addf %3, %101 : vector<16x32xf32>
    %c0_37 = arith.constant 0 : index
    %c0_38 = arith.constant 0 : index
    %c0_39 = arith.constant 0 : index
    %103 = vector.load %arg9[%c0_37, %c0_38, %c0_39] : memref<1x1x32xf32, #tpu.memory_space<vmem>>, vector<1x1x32xf32>
    %104 = vector.shape_cast %103 : vector<1x1x32xf32> to vector<1x32xf32>
    %c0_40 = arith.constant 0 : index
    %c0_41 = arith.constant 0 : index
    %c0_42 = arith.constant 0 : index
    %105 = vector.load %arg10[%c0_40, %c0_41, %c0_42] : memref<1x1x32xf32, #tpu.memory_space<vmem>>, vector<1x1x32xf32>
    %106 = vector.shape_cast %105 : vector<1x1x32xf32> to vector<1x32xf32>
    %cst_43 = arith.constant dense<0.000000e+00> : vector<16xf32>
    %107 = vector.multi_reduction <add>, %102, %cst_43 [1] : vector<16x32xf32> to vector<16xf32>
    %108 = vector.shape_cast %107 : vector<16xf32> to vector<16x1xf32>
    %cst_44 = arith.constant 3.200000e+01 : f32
    %109 = vector.broadcast %cst_44 : f32 to vector<16x1xf32>
    %110 = arith.divf %108, %109 : vector<16x1xf32>
    %111 = vector.broadcast %110 : vector<16x1xf32> to vector<16x32xf32>
    %112 = arith.subf %102, %111 : vector<16x32xf32>
    %113 = arith.mulf %112, %112 : vector<16x32xf32>
    %cst_45 = arith.constant dense<0.000000e+00> : vector<16xf32>
    %114 = vector.multi_reduction <add>, %113, %cst_45 [1] : vector<16x32xf32> to vector<16xf32>
    %115 = vector.shape_cast %114 : vector<16xf32> to vector<16x1xf32>
    %cst_46 = arith.constant 3.200000e+01 : f32
    %116 = vector.broadcast %cst_46 : f32 to vector<16x1xf32>
    %117 = arith.divf %115, %116 : vector<16x1xf32>
    %118 = vector.broadcast %110 : vector<16x1xf32> to vector<16x32xf32>
    %119 = arith.subf %102, %118 : vector<16x32xf32>
    %cst_47 = arith.constant 9.99999974E-6 : f32
    %120 = vector.broadcast %cst_47 : f32 to vector<16x1xf32>
    %121 = arith.addf %117, %120 : vector<16x1xf32>
    %122 = math.rsqrt %121 : vector<16x1xf32>
    %123 = vector.broadcast %122 : vector<16x1xf32> to vector<16x32xf32>
    %124 = arith.mulf %119, %123 : vector<16x32xf32>
    %125 = vector.broadcast %104 : vector<1x32xf32> to vector<16x32xf32>
    %126 = arith.mulf %124, %125 : vector<16x32xf32>
    %127 = vector.broadcast %106 : vector<1x32xf32> to vector<16x32xf32>
    %128 = arith.addf %126, %127 : vector<16x32xf32>
    %129 = arith.truncf %128 : vector<16x32xf32> to vector<16x32xbf16>
    %c0_48 = arith.constant 0 : index
    %c0_49 = arith.constant 0 : index
    %c0_50 = arith.constant 0 : index
    %130 = vector.load %arg11[%c0_48, %c0_49, %c0_50] : memref<1x64x32xbf16, #tpu.memory_space<vmem>>, vector<1x64x32xbf16>
    %131 = vector.shape_cast %130 : vector<1x64x32xbf16> to vector<64x32xbf16>
    %cst_51 = arith.constant dense<0.000000e+00> : vector<16x64xf32>
    %132 = tpu.matmul %129, %131, %cst_51 {dimension_numbers = #tpu.dot_dimension_numbers<[1], [1], [0], [0], [0, 0, 1, 0], [], []>} : vector<16x32xbf16>, vector<64x32xbf16>, vector<16x64xf32> -> vector<16x64xf32>
    %c0_52 = arith.constant 0 : index
    %c0_53 = arith.constant 0 : index
    %c0_54 = arith.constant 0 : index
    %133 = vector.load %arg12[%c0_52, %c0_53, %c0_54] : memref<1x1x64xf32, #tpu.memory_space<vmem>>, vector<1x1x64xf32>
    %134 = vector.shape_cast %133 : vector<1x1x64xf32> to vector<1x64xf32>
    %135 = vector.broadcast %134 : vector<1x64xf32> to vector<16x64xf32>
    %136 = arith.addf %132, %135 : vector<16x64xf32>
    %cst_55 = arith.constant 5.000000e-01 : f32
    %137 = vector.broadcast %cst_55 : f32 to vector<16x64xf32>
    %138 = arith.mulf %137, %136 : vector<16x64xf32>
    %cst_56 = arith.constant 0.707106769 : f32
    %139 = vector.broadcast %cst_56 : f32 to vector<16x64xf32>
    %140 = arith.mulf %136, %139 : vector<16x64xf32>
    %141 = math.erf %140 : vector<16x64xf32>
    %cst_57 = arith.constant 1.000000e+00 : f32
    %142 = vector.broadcast %cst_57 : f32 to vector<16x64xf32>
    %143 = arith.addf %142, %141 : vector<16x64xf32>
    %144 = arith.mulf %138, %143 : vector<16x64xf32>
    %145 = arith.truncf %144 : vector<16x64xf32> to vector<16x64xbf16>
    %c0_58 = arith.constant 0 : index
    %c0_59 = arith.constant 0 : index
    %c0_60 = arith.constant 0 : index
    %146 = vector.load %arg13[%c0_58, %c0_59, %c0_60] : memref<1x32x64xbf16, #tpu.memory_space<vmem>>, vector<1x32x64xbf16>
    %147 = vector.shape_cast %146 : vector<1x32x64xbf16> to vector<32x64xbf16>
    %cst_61 = arith.constant dense<0.000000e+00> : vector<16x32xf32>
    %148 = tpu.matmul %145, %147, %cst_61 {dimension_numbers = #tpu.dot_dimension_numbers<[1], [1], [0], [0], [0, 0, 1, 0], [], []>} : vector<16x64xbf16>, vector<32x64xbf16>, vector<16x32xf32> -> vector<16x32xf32>
    %c0_62 = arith.constant 0 : index
    %c0_63 = arith.constant 0 : index
    %c0_64 = arith.constant 0 : index
    %149 = vector.load %arg14[%c0_62, %c0_63, %c0_64] : memref<1x1x32xf32, #tpu.memory_space<vmem>>, vector<1x1x32xf32>
    %150 = vector.shape_cast %149 : vector<1x1x32xf32> to vector<1x32xf32>
    %151 = vector.broadcast %150 : vector<1x32xf32> to vector<16x32xf32>
    %152 = arith.addf %148, %151 : vector<16x32xf32>
    %153 = arith.addf %128, %152 : vector<16x32xf32>
    %c0_65 = arith.constant 0 : index
    %c0_66 = arith.constant 0 : index
    %c0_67 = arith.constant 0 : index
    %154 = vector.load %arg15[%c0_65, %c0_66, %c0_67] : memref<1x1x32xf32, #tpu.memory_space<vmem>>, vector<1x1x32xf32>
    %155 = vector.shape_cast %154 : vector<1x1x32xf32> to vector<1x32xf32>
    %c0_68 = arith.constant 0 : index
    %c0_69 = arith.constant 0 : index
    %c0_70 = arith.constant 0 : index
    %156 = vector.load %arg16[%c0_68, %c0_69, %c0_70] : memref<1x1x32xf32, #tpu.memory_space<vmem>>, vector<1x1x32xf32>
    %157 = vector.shape_cast %156 : vector<1x1x32xf32> to vector<1x32xf32>
    %cst_71 = arith.constant dense<0.000000e+00> : vector<16xf32>
    %158 = vector.multi_reduction <add>, %153, %cst_71 [1] : vector<16x32xf32> to vector<16xf32>
    %159 = vector.shape_cast %158 : vector<16xf32> to vector<16x1xf32>
    %cst_72 = arith.constant 3.200000e+01 : f32
    %160 = vector.broadcast %cst_72 : f32 to vector<16x1xf32>
    %161 = arith.divf %159, %160 : vector<16x1xf32>
    %162 = vector.broadcast %161 : vector<16x1xf32> to vector<16x32xf32>
    %163 = arith.subf %153, %162 : vector<16x32xf32>
    %164 = arith.mulf %163, %163 : vector<16x32xf32>
    %cst_73 = arith.constant dense<0.000000e+00> : vector<16xf32>
    %165 = vector.multi_reduction <add>, %164, %cst_73 [1] : vector<16x32xf32> to vector<16xf32>
    %166 = vector.shape_cast %165 : vector<16xf32> to vector<16x1xf32>
    %cst_74 = arith.constant 3.200000e+01 : f32
    %167 = vector.broadcast %cst_74 : f32 to vector<16x1xf32>
    %168 = arith.divf %166, %167 : vector<16x1xf32>
    %169 = vector.broadcast %161 : vector<16x1xf32> to vector<16x32xf32>
    %170 = arith.subf %153, %169 : vector<16x32xf32>
    %cst_75 = arith.constant 9.99999974E-6 : f32
    %171 = vector.broadcast %cst_75 : f32 to vector<16x1xf32>
    %172 = arith.addf %168, %171 : vector<16x1xf32>
    %173 = math.rsqrt %172 : vector<16x1xf32>
    %174 = vector.broadcast %173 : vector<16x1xf32> to vector<16x32xf32>
    %175 = arith.mulf %170, %174 : vector<16x32xf32>
    %176 = vector.broadcast %155 : vector<1x32xf32> to vector<16x32xf32>
    %177 = arith.mulf %175, %176 : vector<16x32xf32>
    %178 = vector.broadcast %157 : vector<1x32xf32> to vector<16x32xf32>
    %179 = arith.addf %177, %178 : vector<16x32xf32>
    %c0_76 = arith.constant 0 : index
    %c0_77 = arith.constant 0 : index
    %180 = vector.load %arg20[%c0_76, %c0_77] : memref<16x32xf32, #tpu.memory_space<vmem>>, vector<16x32xf32>
    tpu.vector_store %arg20[%c0_76, %c0_77], %179 {strides = array<i32>} : memref<16x32xf32, #tpu.memory_space<vmem>>, vector<16x32xf32>,
    %c1_i32 = arith.constant 1 : i32
    %181 = arith.cmpi eq, %arg1, %c1_i32 : i32
    %182 = arith.extui %181 : i1 to i32
    %c0_i32_78 = arith.constant 0 : i32
    %183 = arith.cmpi ne, %182, %c0_i32_78 : i32
    scf.if %183 {
      %184 = arith.truncf %179 : vector<16x32xf32> to vector<16x32xbf16>
      %c0_79 = arith.constant 0 : index
      %c0_80 = arith.constant 0 : index
      %185 = vector.load %arg17[%c0_79, %c0_80] : memref<128x32xbf16, #tpu.memory_space<vmem>>, vector<128x32xbf16>
      %cst_81 = arith.constant dense<0.000000e+00> : vector<16x128xf32>
      %186 = tpu.matmul %184, %185, %cst_81 {dimension_numbers = #tpu.dot_dimension_numbers<[1], [1], [0], [0], [0, 0, 1, 0], [], []>} : vector<16x32xbf16>, vector<128x32xbf16>, vector<16x128xf32> -> vector<16x128xf32>
      %c0_82 = arith.constant 0 : index
      %c0_83 = arith.constant 0 : index
      %187 = vector.load %arg18[%c0_82, %c0_83] : memref<1x128xf32, #tpu.memory_space<vmem>>, vector<1x128xf32>
      %188 = vector.broadcast %187 : vector<1x128xf32> to vector<16x128xf32>
      %189 = arith.addf %186, %188 : vector<16x128xf32>
      %c0_84 = arith.constant 0 : index
      %c0_85 = arith.constant 0 : index
      %c0_86 = arith.constant 0 : index
      %190 = vector.load %arg19[%c0_84, %c0_85, %c0_86] : memref<1x16x128xf32, #tpu.memory_space<vmem>>, vector<1x16x128xf32>
      %191 = vector.shape_cast %190 : vector<1x16x128xf32> to vector<16x128xf32>
      %192 = vector.shape_cast %189 : vector<16x128xf32> to vector<1x16x128xf32>
      tpu.vector_store %arg19[%c0_84, %c0_85, %c0_86], %192 {strides = array<i32>} : memref<1x16x128xf32, #tpu.memory_space<vmem>>, vector<1x16x128xf32>,
    } else {
    }
    return
  }
  func.func @transform_0(%arg0: i32, %arg1: i32) -> (i32, i32, i32) {
    %c0_i32 = arith.constant 0 : i32
    %c0_i32_0 = arith.constant 0 : i32
    %c0_i32_1 = arith.constant 0 : i32
    return %arg0, %c0_i32, %c0_i32_0 : i32, i32, i32
  }
  func.func @transform_1(%arg0: i32, %arg1: i32) -> (i32, i32) {
    %c0_i32 = arith.constant 0 : i32
    %c0_i32_0 = arith.constant 0 : i32
    %c0_i32_1 = arith.constant 0 : i32
    return %c0_i32, %c0_i32_0 : i32, i32
  }
  func.func @transform_2(%arg0: i32, %arg1: i32) -> (i32, i32, i32) {
    %c0_i32 = arith.constant 0 : i32
    %c0_i32_0 = arith.constant 0 : i32
    %c0_i32_1 = arith.constant 0 : i32
    return %arg0, %c0_i32, %c0_i32_0 : i32, i32, i32
  }
  func.func @transform_3(%arg0: i32, %arg1: i32) -> (i32, i32, i32) {
    %c0_i32 = arith.constant 0 : i32
    %c0_i32_0 = arith.constant 0 : i32
    %c0_i32_1 = arith.constant 0 : i32
    return %arg1, %c0_i32, %c0_i32_0 : i32, i32, i32
  }
  func.func @transform_4(%arg0: i32, %arg1: i32) -> (i32, i32, i32) {
    %c0_i32 = arith.constant 0 : i32
    %c0_i32_0 = arith.constant 0 : i32
    %c0_i32_1 = arith.constant 0 : i32
    return %arg1, %c0_i32, %c0_i32_0 : i32, i32, i32
  }
  func.func @transform_5(%arg0: i32, %arg1: i32) -> (i32, i32, i32) {
    %c0_i32 = arith.constant 0 : i32
    %c0_i32_0 = arith.constant 0 : i32
    %c0_i32_1 = arith.constant 0 : i32
    return %arg1, %c0_i32, %c0_i32_0 : i32, i32, i32
  }
  func.func @transform_6(%arg0: i32, %arg1: i32) -> (i32, i32, i32) {
    %c0_i32 = arith.constant 0 : i32
    %c0_i32_0 = arith.constant 0 : i32
    %c0_i32_1 = arith.constant 0 : i32
    return %arg1, %c0_i32, %c0_i32_0 : i32, i32, i32
  }
  func.func @transform_7(%arg0: i32, %arg1: i32) -> (i32, i32, i32) {
    %c0_i32 = arith.constant 0 : i32
    %c0_i32_0 = arith.constant 0 : i32
    %c0_i32_1 = arith.constant 0 : i32
    return %arg1, %c0_i32, %c0_i32_0 : i32, i32, i32
  }
  func.func @transform_8(%arg0: i32, %arg1: i32) -> (i32, i32, i32) {
    %c0_i32 = arith.constant 0 : i32
    %c0_i32_0 = arith.constant 0 : i32
    %c0_i32_1 = arith.constant 0 : i32
    return %arg1, %c0_i32, %c0_i32_0 : i32, i32, i32
  }
  func.func @transform_9(%arg0: i32, %arg1: i32) -> (i32, i32, i32) {
    %c0_i32 = arith.constant 0 : i32
    %c0_i32_0 = arith.constant 0 : i32
    %c0_i32_1 = arith.constant 0 : i32
    return %arg1, %c0_i32, %c0_i32_0 : i32, i32, i32
  }
  func.func @transform_10(%arg0: i32, %arg1: i32) -> (i32, i32, i32) {
    %c0_i32 = arith.constant 0 : i32
    %c0_i32_0 = arith.constant 0 : i32
    %c0_i32_1 = arith.constant 0 : i32
    return %arg1, %c0_i32, %c0_i32_0 : i32, i32, i32
  }
  func.func @transform_11(%arg0: i32, %arg1: i32) -> (i32, i32, i32) {
    %c0_i32 = arith.constant 0 : i32
    %c0_i32_0 = arith.constant 0 : i32
    %c0_i32_1 = arith.constant 0 : i32
    return %arg1, %c0_i32, %c0_i32_0 : i32, i32, i32
  }
  func.func @transform_12(%arg0: i32, %arg1: i32) -> (i32, i32, i32) {
    %c0_i32 = arith.constant 0 : i32
    %c0_i32_0 = arith.constant 0 : i32
    %c0_i32_1 = arith.constant 0 : i32
    return %arg1, %c0_i32, %c0_i32_0 : i32, i32, i32
  }
  func.func @transform_13(%arg0: i32, %arg1: i32) -> (i32, i32, i32) {
    %c0_i32 = arith.constant 0 : i32
    %c0_i32_0 = arith.constant 0 : i32
    %c0_i32_1 = arith.constant 0 : i32
    return %arg1, %c0_i32, %c0_i32_0 : i32, i32, i32
  }
  func.func @transform_14(%arg0: i32, %arg1: i32) -> (i32, i32, i32) {
    %c0_i32 = arith.constant 0 : i32
    %c0_i32_0 = arith.constant 0 : i32
    %c0_i32_1 = arith.constant 0 : i32
    return %arg1, %c0_i32, %c0_i32_0 : i32, i32, i32
  }
  func.func @transform_15(%arg0: i32, %arg1: i32) -> (i32, i32) {
    %c0_i32 = arith.constant 0 : i32
    %c0_i32_0 = arith.constant 0 : i32
    %c0_i32_1 = arith.constant 0 : i32
    return %c0_i32, %c0_i32_0 : i32, i32
  }
  func.func @transform_16(%arg0: i32, %arg1: i32) -> (i32, i32) {
    %c0_i32 = arith.constant 0 : i32
    %c0_i32_0 = arith.constant 0 : i32
    %c0_i32_1 = arith.constant 0 : i32
    return %c0_i32, %c0_i32_0 : i32, i32
  }
  func.func @transform_17(%arg0: i32, %arg1: i32) -> (i32, i32, i32) {
    %c0_i32 = arith.constant 0 : i32
    %c0_i32_0 = arith.constant 0 : i32
    %c0_i32_1 = arith.constant 0 : i32
    return %arg0, %c0_i32, %c0_i32_0 : i32, i32, i32
  }
}

</mosaic_0001>

<bundles_post_ra>
// kernel: tpu_custom_call.1
= control target key start
LH: loop header
LB: loop body
LE: loop exit
PB: predicated region body
PF: predicated region fallthrough
CT: control target
= control target key end

     0   :  { %s3186_s0 = inlined_call_operand.vmem [shape: f32[2,16,32], index: 0, kind: input, shape index: {}]   ;;  %s3187_s1 = inlined_call_operand.vmem [shape: f32[16,16], index: 1, kind: input, shape index: {}]   ;;  %s3188_s2 = inlined_call_operand.vmem [shape: f32[2,1,16], index: 2, kind: input, shape index: {}]   ;;  %s3189_s3 = inlined_call_operand.vmem [shape: bf16[2,96,32], index: 3, kind: input, shape index: {}]   ;;  %s3190_s4 = inlined_call_operand.vmem [shape: f32[2,1,96], index: 4, kind: input, shape index: {}]   ;;  %s3191_s5 = inlined_call_operand.vmem [shape: bf16[2,32,32], index: 5, kind: input, shape index: {}]   ;;  %s3192_s6 = inlined_call_operand.vmem [shape: f32[2,1,32], index: 6, kind: input, shape index: {}]   ;;  %s3193_s7 = inlined_call_operand.vmem [shape: f32[2,1,32], index: 7, kind: input, shape index: {}]   ;;  %s3194_s8 = inlined_call_operand.vmem [shape: f32[2,1,32], index: 8, kind: input, shape index: {}]   ;;  %s3195_s9 = inlined_call_operand.vmem [shape: bf16[2,64,32], index: 9, kind: input, shape index: {}]   ;;  %s3196_s10 = inlined_call_operand.vmem [shape: f32[2,1,64], index: 10, kind: input, shape index: {}]   ;;  %s3197_s11 = inlined_call_operand.vmem [shape: bf16[2,32,64], index: 11, kind: input, shape index: {}]   ;;  %s3198_s12 = inlined_call_operand.vmem [shape: f32[2,1,32], index: 12, kind: input, shape index: {}]   ;;  %s3199_s13 = inlined_call_operand.vmem [shape: f32[2,1,32], index: 13, kind: input, shape index: {}]   ;;  %s3200_s14 = inlined_call_operand.vmem [shape: f32[2,1,32], index: 14, kind: input, shape index: {}]   ;;  %s3201_s15 = inlined_call_operand.vmem [shape: bf16[128,32], index: 15, kind: input, shape index: {}]   ;;  %s3202_s16 = inlined_call_operand.vmem [shape: f32[1,128], index: 16, kind: input, shape index: {}]   ;;  %s3203_s17 = inlined_call_operand.hbm [shape: f32[2,16,128], index: 17, kind: output, shape index: {}]  }
   0x1   :  { %3221 = sst [smem:[#allocation19_spill]] %s3186_s0 }
   0x2   :  { %3222 = sst [smem:[#allocation20_spill]] %s3187_s1 }
   0x3   :  { %3223 = sst [smem:[#allocation21_spill]] %s3188_s2 }
   0x4   :  { %3224 = sst [smem:[#allocation22_spill]] %s3189_s3 }
   0x5   :  { %3225 = sst [smem:[#allocation23_spill]] %s3191_s5 }
   0x6   :  { %3226 = sst [smem:[#allocation24_spill]] %s3193_s7 }
   0x7   :  { %3227 = sst [smem:[#allocation25_spill]] %s3194_s8 }
   0x8   :  { %3228 = sst [smem:[#allocation26_spill]] %s3195_s9 }
   0x9   :  { %3229 = sst [smem:[#allocation27_spill]] %s3199_s13 }
   0xa   :  { %3230 = sst [smem:[#allocation28_spill]] %s3200_s14 }
   0xb   :  { %3231 = sst [smem:[#allocation29_spill]] %s3201_s15 }
   0xc   :  { %3232 = sst [smem:[#allocation30_spill]] %s3202_s16 }
   0xd   :  { %3233 = sst [smem:[#allocation31_spill]] %s3203_s17 }
   0xe   :  { %22 = vsyncpa [#allocation4], 0 }
   0xf   :  { %24 = vsyncpa [#allocation4 + $0x1], 0  ;;  %s2723_s24 = smov 0   ;;  %s2725_s25 = smov 0  }
  0x10   :  { %s2727_s26 = smov 0   ;;  %s2729_s27 = smov 0  }
  0x11   :  { %s2731_s28 = smov 0   ;;  %s2733_s29 = smov 0  }
  0x12   :  { %s2735_s0 = smov 0   ;;  %s2737_s30 = smov 0  }
  0x13 LB: > { %3234 = sst [smem:[#allocation6_spill]] %s2583_s24  ;;  %s2118_s18 = sadd.s32 4294967295, %s2611_s30   ;;  %s2611_s30 = sphi %s2737_s30, %s30_s30   ;;  %s2607_s0 = sphi %s2735_s0, %s3288_s0   ;;  %s2603_s29 = sphi %s2733_s29, %s3287_s29   ;;  %s2599_s28 = sphi %s2731_s28, %s3286_s28   ;;  %s2595_s27 = sphi %s2729_s27, %s3285_s27   ;;  %s2591_s26 = sphi %s2727_s26, %s3284_s26   ;;  %s2587_s25 = sphi %s2725_s25, %s3283_s25   ;;  %s2583_s24 = sphi %s2723_s24, %s3282_s24  }
  0x14   : > { %3235 = sst [smem:[#allocation7_spill]] %s2587_s25  ;;  %s2119_s19 = sadd.s32 4294967294, %s2611_s30  }
  0x15   : > { %3236 = sst [smem:[#allocation8_spill]] %s2591_s26  ;;  %s39_s1 = sadd.s32 1, %s2603_s29 }
  0x16   : > { %3237 = sst [smem:[#allocation9_spill]] %s2595_s27  ;;  %p40_p0 = scmp.ge.s32.totalorder %s39_s1, 2 }
  0x17   : > { %3238 = sst [smem:[#allocation10_spill]] %s2599_s28  ;;  %s42_s20 = sadd.s32 1, %s2607_s0 }
  0x18   : > { %3239 = sst [smem:[#allocation11_spill]] %s2603_s29  ;;  %p486_p1 = scmp.ne.s32.totalorder %s2591_s26, %s2587_s25 }
  0x19   : > { %3240 = sst [smem:[#allocation12_spill]] %s2607_s0  ;;  %p487_p2 = scmp.eq.s32.totalorder %s2118_s18, 3 }
  0x1a   : > { %3241 = sst [smem:[#allocation13_spill]] %s2611_s30  ;;  %s3290_s1 = smov (%p40_p0, %s39_s1), 0 }
  0x1b   : > { %3242 = sst [smem:[#allocation14_spill]] %s3290_s1  ;;  %s3292_s20 = smov (!%p40_p0, %s42_s20), %s2607_s0 }
  0x1c   : > { %p2772_p3 = por %p487_p2, %p486_p1  ;;  %p492_p4 = scmp.ne.s32.totalorder %s2587_s25, %s2583_s24 }
  0x1d   : > { %p44_p5 = scmp.ge.s32.totalorder %s3292_s20, 2  ;;  %p493_p6 = scmp.eq.s32.totalorder %s2119_s19, 3 }
  0x1e   : > { %s3243_s21 = scalar_select %p2772_p3, 1, 0 }
  0x1f   : > { %p2122_p7 = scmp.ge.s32.totalorder %s2611_s30, 1  ;;  %p614_p8 = scmp.lt.s32.totalorder %s2611_s30, 5 }
  0x20   : > { %3244 = sst [smem:[#allocation15_spill]] %s3243_s21  ;;  %s3294_s20 = smov (%p44_p5, %s3292_s20), 0 }
  0x21   : > { %3245 = sst [smem:[#allocation16_spill]] %s3294_s20  ;;  %p2782_p9 = por %p493_p6, %p492_p4 }
  0x22   : > { %p615_p10 = pnand %p2122_p7, %p614_p8  ;;  %s473_s23 = ssub.s32 %s2607_s0, %s3294_s20 }
  0x23   : > { %s3246_s22 = scalar_select %p2782_p9, 1, 0 }
  0x24   : > { %s476_s18 = sadd.s32 1, %s2591_s26  ;;  %p474_p11 = scmp.eq.s32.totalorder %s473_s23, 0 }
  0x25   : > { %3247 = sst [smem:[#allocation17_spill]] %s3246_s22  ;;  %618 = sbr.rel (%p615_p10) target bundleno = 3964 (0xf7c), region = 88 }
  0x26   : > { %s2790_s1 = scalar_select %p474_p11, %s2591_s26, %s476_s18  }
  0x27   : > { %s3209_s19 = sand.u32 (!%p615_p10), 1, %s2587_s25   ;;  %p713_p12 = scmp.lt.s32.totalorder (!%p615_p10), %s2599_s28, 1 }
  0x28   : > { %3248 = sst [smem:[#allocation18_spill]] %s2790_s1  ;;  %s2123_s29 = sshll.u32 (!%p615_p10), %s3209_s19, 4 }
  0x29   : > { %p721_p13 = scmp.lt.s32.totalorder (!%p615_p10), %s2595_s27, 1  ;;  %s3250_s22 = sld [smem:[#allocation19_spill]] (!%p615_p10) }
  0x2a   : > { %s3251_s3 = sld [smem:[#allocation22_spill]] (!%p615_p10)  ;;  %s3252_s5 = sld [smem:[#allocation23_spill]] (!%p615_p10) }
  0x2b   : > { %s3255_s9 = sld [smem:[#allocation26_spill]] (!%p615_p10)  ;;  %s3256_s25 = sld [smem:[#allocation27_spill]] (!%p615_p10) }
  0x2c   : > { %s2798_s24 = scalar_select %p713_p12, %s2599_s28, 1 }
  0x2d   : > { %s2801_s20 = scalar_select %p721_p13, %s2595_s27, 1 }
  0x2e   : > { %s2185_s23 = sshll.u32 %s2798_s24, 4  ;;  %s3257_s27 = sld [smem:[#allocation28_spill]] }
  0x2f   : > { %s717_s30 = scalar_lea.vmem %s3250_s22, %s2185_s23  ;;  %s2345_s17 = smul.u32 48, %s2801_s20 }
  0x30   : > { %s2186_s16 = sshll.u32 %s2801_s20, 4  ;;  %s2187_s15 = sshll.u32 %s2801_s20, 5 }
  0x31   : > { %s2820_s14 = scalar_lea.vmem %s3251_s3, %s2345_s17  ;;  %s2825_s18 = scalar_lea.vmem %s3252_s5, %s2186_s16 }
  0x32   : > { %s2843_s3 = scalar_lea.vmem %s3255_s9, %s2187_s15  ;;  %s750_s5 = scalar_lea.vmem %s3196_s10, %s2801_s20 }
  0x33   : > { %s2852_s1 = scalar_lea.vmem %s3197_s11, %s2186_s16  ;;  %s758_s28 = scalar_lea.vmem %s3198_s12, %s2801_s20 }
  0x34   : > { %s761_s8 = scalar_lea.vmem %s3256_s25, %s2801_s20  ;;  %s764_s9 = scalar_lea.vmem %s3257_s27, %s2801_s20 }
  0x35   : > { %s2866_s7 = scalar_lea.vmem [#allocation3], %s2123_s29  ;;  %s3258_s13 = sld [smem:[#allocation9_spill]] }
  0x3b   : > { %p2133_p0 = scmp.ne.s32.totalorder %s3258_s13, 0 }
  0x3c   : > { %v770_v0 = vld [vmem:[%s717_s30] sm:$0xff] (!%p2133_p0)  ;;  %vm772_vm0 = vcmask (!%p2133_p0), 261120   ;;  %v771_v1 = vld [vmem:[%s717_s30 + $0x8] sm:$0xff] (!%p2133_p0) }
  0x3d   : > { %769 = sbr.rel (%p2133_p0) target bundleno = 68 (0x44), region = 92  ;;  %773 = vst.msk [vmem:[#allocation2] sm:$0xff] (!%p2133_p0), %vm772_vm0, %v770_v0  ;;  %774 = vst.msk [vmem:[#allocation2 + $0x8] sm:$0xff] (!%p2133_p0), %vm772_vm0, %v771_v1 }
  0x44 PF: > { %v2451_v2 = vld [vmem:[%s2820_s14] sm:$0xff]   ;;  %v2613_v3 = vmov 0.0   ;;  %vm838_vm1 = vcmask 261120   ;;  %v2452_v5 = vld [vmem:[%s2820_s14 + $0x8] sm:$0xff]   ;;  %vm2614_vm2 = vmmov 0   ;;  %v2453_v7 = vld [vmem:[%s2820_s14 + $0x10] sm:$0xff]   ;;  %s3264_s17 = scalar_lea.vmem %s3192_s6, %s2801_s20 }
  0x45   : > { %2233 = vmatprep.subr.bf16.mxu0 %v2613_v3  ;;  %2249 = vmatprep.subr.bf16.mxu1 %v2613_v3  ;;  %v843_v4 = vsel %vm838_vm1, %v2451_v2, 0  ;;  %v846_v6 = vsel %vm838_vm1, %v2452_v5, 0  ;;  %v849_v8 = vsel %vm838_vm1, %v2453_v7, 0  ;;  %v2454_v9 = vld [vmem:[%s2820_s14 + $0x18] sm:$0xff]   ;;  %v2455_v11 = vld [vmem:[%s2820_s14 + $0x20] sm:$0xff]   ;;  %v2456_v13 = vld [vmem:[%s2820_s14 + $0x28] sm:$0xff]   ;;  %s3259_s14 = scalar_lea.vmem %s3190_s4, %s2801_s20 }
  0x46   : > { %2234 = vmatpush3.bf16.xpose.msra.mxu0 %v843_v4  ;;  %2245 = vmatprep.mubr.msk.bf16.mxu0 %vm2614_vm2, %v2613_v3  ;;  %v852_v10 = vsel %vm838_vm1, %v2454_v9, 0  ;;  %v855_v12 = vsel %vm838_vm1, %v2455_v11, 0  ;;  %v858_v14 = vsel %vm838_vm1, %v2456_v13, 0  ;;  %v2892_v15 = vld [vmem:[#allocation2] sm:$0xff]  ;;  %v2894_v16 = vld [vmem:[#allocation2 + $0x8] sm:$0xff]  ;;  %s2615_s29 = smov 96  }
  0x47   : > { %2235 = vmatprep.subr.bf16.mxu0 %v2613_v3  ;;  %2251 = vmatprep.mubr.msk.bf16.mxu1 %vm2614_vm2, %v2613_v3  ;;  %v788_v17 = vpack.c.bf16 %v2894_v16, %v2892_v15  ;;  %v2135_v18 = vld [vmem:[%s3259_s14] ss:$0 sm:$0xff]  ;;  %vm908_vm3 = vcmask 64512   ;;  %s3260_s0 = sld [smem:[#allocation20_spill]]  ;;  %s3262_s23 = sld [smem:[#allocation21_spill]]  ;;  %vm956_vm4 = vcmask 130048  }
  0x48   : > { %s2617_s27 = smov 88   ;;  %s2618_s13 = smov 120   ;;  %vm1419_vm5 = vcmask 195584   ;;  %vm1665_vm6 = vcmask 523264  }
  0x49   : > { %s2619_s2 = smov 72   ;;  %s2620_s16 = smov 56  }
  0x4a   : > { %s2621_s14 = smov 80   ;;  %s2623_s30 = smov 104  }
  0x4b   : > { %s2624_s25 = smov 48   ;;  %s2626_s26 = smov 40  }
  0x4c   : > { %s2627_s22 = smov 16  }
  0x4d   : > { %s3261_s19 = smov %s3260_s0  ;;  %v777_v31 = vld [vmem:[%s3260_s0] sm:$0xff]  ;;  %s3263_s21 = scalar_lea.vmem %s3262_s23, %s2798_s24 }
  0x4e   : > { %2236 = vmatpush3.bf16.xpose.msra.mxu0 %v846_v6  ;;  %v2134_v32 = vld [vmem:[%s3263_s21] ss:$0 sm:$0xff]  ;;  %v778_v33 = vld [vmem:[%s3261_s19 + $0x8] sm:$0xff]  ;;  %s2616_s24 = smov 64   ;;  %s2625_s0 = smov 8  }
  0x4f   : > { %2237 = vmatprep.subr.bf16.mxu0 %v2613_v3  ;;  %v2929_v34 = vadd.f32 %v2134_v32, %v777_v31  ;;  %v2931_v35 = vadd.f32 %v2134_v32, %v778_v33  ;;  %s2628_s23 = smov 24   ;;  %s3271_s21 = sld [smem:[#allocation9_spill]] }
  0x55   : > { %p2169_p1 = scmp.ne.s32.totalorder %s3271_s21, 1 }
  0x56   : > { %2238 = vmatpush3.bf16.xpose.msra.mxu0 %v849_v8  ;;  %s3272_s15 = sld [smem:[#allocation29_spill]] (!%p2169_p1)  ;;  %vm2630_vm7 = vmmov (!%p2169_p1), 0  }
  0x57   : > { %2239 = vmatprep.subr.bf16.mxu0 %v2613_v3 }
  0x5e   : > { %2240 = vmatpush3.bf16.xpose.msra.mxu0 %v852_v10 }
  0x5f   : > { %2241 = vmatprep.subr.bf16.mxu0 %v2613_v3 }
  0x66   : > { %2242 = vmatpush3.bf16.xpose.msra.mxu0 %v855_v12 }
  0x67   : > { %2243 = vmatprep.subr.bf16.mxu0 %v2613_v3 }
  0x6e   : > { %2244 = vmatpush3.bf16.xpose.msra.mxu0 %v858_v14 }
  0x6f   : > { %2285 = vmatprep.subr.bf16.mxu0 %v2613_v3 }
  0x75   : > { %2246 = vmatmul.mubr.msk.bf16.vlgmr.msra.gmra.mrb[0].mxu0 %vm838_vm1, %v788_v17 }
  0x76   : > { %2287 = vmatprep.mubr.msk.bf16.mxu0 %vm2614_vm2, %v2613_v3 }
 0x148   : > { %v894_v19 = vpop.f32.mrb[0].mxu0 }
 0x149   : > { %v895_v20 = vadd.f32 %v2135_v18, %v894_v19  ;;  %v2247_v21 = vpop.f32.mrb[1].mxu0 }
 0x14a   : > { %v897_v22 = vpop.f32.mrb[2].mxu0 }
 0x14b   : > { %v898_v23 = vadd.f32 %v2135_v18, %v897_v22  ;;  %v2248_v24 = vpop.f32.mrb[3].mxu0  ;;  %v901_v25 = vmul.f32 0.35355338, %v895_v20 }
 0x14d   : > { %v902_v26 = vmul.f32 0.35355338, %v898_v23  ;;  %v2907_v27 = vpack.c.bf16 %v898_v23, %v895_v20 }
 0x14f   : > { %v2909_v28 = vpack.c.bf16 %v902_v26, %v901_v25  ;;  %906 = vrot.lane.b32.xlu0 %v2907_v27, %s2615_s29  ;;  %s2622_s29 = smov 112  }
 0x1c1   : > { %v907_v29 = vpop.permute.xlu0 %906 }
 0x1c2   : > { %v913_v30 = vsel %vm908_vm3, %v907_v29, 0 }
 0x1c3   : > { %2250 = vmatpush3.bf16.xpose.msra.mxu1 %v913_v30 }
 0x1c4   : > { %2255 = vmatprep.subr.bf16.mxu1 %v2613_v3 }
 0x1ca   : > { %2252 = vmatmul.mubr.msk.bf16.vlgmr.msra.gmra.mrb[0].mxu1 %vm908_vm3, %v2909_v28 }
 0x1cb   : > { %2257 = vmatprep.mubr.msk.bf16.mxu1 %vm2614_vm2, %v2613_v3 }
 0x29d   : > { %v949_v36 = vpop.f32.mrb[0].mxu1 }
 0x29e   : > { %v950_v37 = vadd.f32 %v949_v36, %v2929_v34  ;;  %v2253_v38 = vpop.f32.mrb[1].mxu1 }
 0x29f   : > { %v952_v39 = vpop.f32.mrb[2].mxu1 }
 0x2a0   : > { %v953_v40 = vadd.f32 %v952_v39, %v2931_v35  ;;  %v2254_v41 = vpop.f32.mrb[3].mxu1  ;;  %v957_v42 = vsel %vm956_vm4, %v950_v37, -inf }
 0x2a1   : > { %958 = vmax.xlane.f32.xlu0 %v957_v42 }
 0x2a2   : > { %v960_v43 = vsel %vm956_vm4, %v953_v40, -inf }
 0x2a3   : > { %961 = vmax.xlane.f32.xlu1 %v960_v43 }
 0x2b4   : > { %980 = vrot.lane.b32.xlu1 %v2907_v27, %s2616_s24 }
 0x32e   : > { %v959_v44 = vpop.xlane.xlu0 %958 }
 0x32f   : > { %v963_v45 = vsub.f32 %v950_v37, %v959_v44 }
 0x330   : > { %v962_v46 = vpop.xlane.xlu1 %961 }
 0x331   : > { %v965_v47 = vmul.f32 1.442695, %v963_v45  ;;  %v964_v48 = vsub.f32 %v953_v40, %v962_v46 }
 0x333   : > { %2465 = vpow2.f32 %v965_v47  ;;  %v967_v49 = vmul.f32 1.442695, %v964_v48 }
 0x334   : > { %v981_v50 = vpop.permute.xlu1 %980 }
 0x335   : > { %2467 = vpow2.f32 %v967_v49  ;;  %2256 = vmatpush3.bf16.msra.mxu1 %v981_v50 }
 0x336   : > { %2261 = vmatprep.subr.bf16.mxu1 %v2613_v3 }
 0x33d   : > { %v2466_v51 = vpop.eup %2465 }
 0x33e   : > { %v969_v52 = vsel %vm956_vm4, %v2466_v51, 0.0 }
 0x33f   : > { %v2468_v53 = vpop.eup %2467  ;;  %970 = vadd.xlane.f32.xlu1 %v969_v52 }
 0x340   : > { %v972_v54 = vsel %vm956_vm4, %v2468_v53, 0.0 }
 0x343   : > { %973 = vadd.xlane.f32.xlu1 %v972_v54 }
 0x354   : > { %1030 = vrot.lane.b32.xlu1 %v2907_v27, %s2617_s27  ;;  %s3265_s27 = sld [smem:[#allocation24_spill]] }
 0x358   : > { %1028 = vrot.lane.b32.xlu1 %v2909_v28, %s2618_s13 }
 0x35a   : > { %s3266_s13 = scalar_lea.vmem %s3265_s27, %s2801_s20 }
 0x3cc   : > { %v971_v55 = vpop.xlane.xlu1 %970 }
 0x3cd   : > { %2469 = vrcp.f32 %v971_v55 }
 0x3d0   : > { %v974_v56 = vpop.xlane.xlu1 %973 }
 0x3d1   : > { %2471 = vrcp.f32 %v974_v56 }
 0x3d4   : > { %v1031_v61 = vpop.permute.xlu1 %1030 }
 0x3d5   : > { %v1036_v63 = vsel %vm908_vm3, %v1031_v61, 0 }
 0x3d7   : > { %v2470_v57 = vpop.eup %2469 }
 0x3d8   : > { %v977_v59 = vmul.f32 %v2470_v57, %v2466_v51  ;;  %v1029_v0 = vpop.permute.xlu1 %1028 }
 0x3db   : > { %v2472_v58 = vpop.eup %2471 }
 0x3dc   : > { %v978_v60 = vmul.f32 %v2472_v58, %v2468_v53 }
 0x3de   : > { %v979_v62 = vpack.c.bf16 %v978_v60, %v977_v59 }
 0x3e0   : > { %2258 = vmatmul.mubr.msk.bf16.vlgmr.msra.gmra.mrb[4].mxu1 %vm956_vm4, %v979_v62 }
 0x3e1   : > { %2262 = vmatpush3.bf16.xpose.msra.mxu1 %v1036_v63  ;;  %2263 = vmatprep.mubr.msk.bf16.mxu1 %vm2614_vm2, %v2613_v3 }
 0x3e2   : > { %2267 = vmatprep.subr.bf16.mxu1 %v2613_v3 }
 0x3e8   : > { %2264 = vmatmul.mubr.msk.bf16.vlgmr.msra.gmra.mrb[8].mxu1 %vm908_vm3, %v1029_v0 }
 0x3e9   : > { %2269 = vmatprep.mubr.msk.bf16.mxu1 %vm2614_vm2, %v2613_v3 }
 0x4b3   : > { %v2951_v1 = vpop.f32.mrb[4].mxu1 }
 0x4b4   : > { %v2259_v2 = vpop.f32.mrb[5].mxu1 }
 0x4b5   : > { %v2953_v4 = vpop.f32.mrb[6].mxu1 }
 0x4b6   : > { %v2260_v5 = vpop.f32.mrb[7].mxu1 }
 0x4bb   : > { %v1072_v6 = vpop.f32.mrb[8].mxu1 }
 0x4bc   : > { %v1073_v7 = vadd.f32 %v1072_v6, %v2929_v34  ;;  %v2265_v8 = vpop.f32.mrb[9].mxu1 }
 0x4bd   : > { %v1075_v9 = vpop.f32.mrb[10].mxu1 }
 0x4be   : > { %v1076_v10 = vadd.f32 %v1075_v9, %v2931_v35  ;;  %v2266_v11 = vpop.f32.mrb[11].mxu1  ;;  %v1079_v12 = vsel %vm956_vm4, %v1073_v7, -inf }
 0x4bf   : > { %1080 = vmax.xlane.f32.xlu0 %v1079_v12 }
 0x4c0   : > { %v1082_v13 = vsel %vm956_vm4, %v1076_v10, -inf }
 0x4c1   : > { %1083 = vmax.xlane.f32.xlu1 %v1082_v13 }
 0x4d2   : > { %1272 = vrot.lane.b32.xlu1 %v2907_v27, %s2619_s2 }
 0x4d5   : > { %1102 = vrot.lane.b32.xlu0 %v2907_v27, %s2620_s16  ;;  %s3267_s16 = sld [smem:[#allocation25_spill]] }
 0x54c   : > { %v1081_v14 = vpop.xlane.xlu0 %1080 }
 0x54d   : > { %v1085_v17 = vsub.f32 %v1073_v7, %v1081_v14 }
 0x54e   : > { %v1084_v18 = vpop.xlane.xlu1 %1083 }
 0x54f   : > { %v1087_v19 = vmul.f32 1.442695, %v1085_v17  ;;  %v1086_v20 = vsub.f32 %v1076_v10, %v1084_v18 }
 0x550   : > { %v1103_v21 = vpop.permute.xlu0 %1102 }
 0x551   : > { %2473 = vpow2.f32 %v1087_v19  ;;  %v1089_v22 = vmul.f32 1.442695, %v1086_v20  ;;  %2268 = vmatpush3.bf16.msra.mxu1 %v1103_v21 }
 0x552   : > { %v1273_v23 = vpop.permute.xlu1 %1272  ;;  %2273 = vmatprep.subr.bf16.mxu1 %v2613_v3 }
 0x553   : > { %2475 = vpow2.f32 %v1089_v22  ;;  %v1278_v24 = vsel %vm908_vm3, %v1273_v23, 0 }
 0x554   : > { %2286 = vmatpush3.bf16.xpose.msra.mxu0 %v1278_v24 }
 0x555   : > { %2297 = vmatprep.subr.bf16.mxu0 %v2613_v3 }
 0x55b   : > { %v2474_v25 = vpop.eup %2473 }
 0x55c   : > { %v1091_v26 = vsel %vm956_vm4, %v2474_v25, 0.0 }
 0x55d   : > { %v2476_v29 = vpop.eup %2475  ;;  %1092 = vadd.xlane.f32.xlu0 %v1091_v26 }
 0x55e   : > { %v1094_v30 = vsel %vm956_vm4, %v2476_v29, 0.0 }
 0x561   : > { %1095 = vadd.xlane.f32.xlu0 %v1094_v30 }
 0x577   : > { %1151 = vrot.lane.b32.xlu0 %v2907_v27, %s2621_s14  ;;  %s3268_s14 = scalar_lea.vmem %s3267_s16, %s2801_s20 }
 0x57b   : > { %1149 = vrot.lane.b32.xlu0 %v2909_v28, %s2622_s29 }
 0x57f   : > { %1270 = vrot.lane.b32.xlu0 %v2909_v28, %s2623_s30 }
 0x5ea   : > { %v1093_v31 = vpop.xlane.xlu0 %1092 }
 0x5eb   : > { %2477 = vrcp.f32 %v1093_v31 }
 0x5ee   : > { %v1096_v32 = vpop.xlane.xlu0 %1095 }
 0x5ef   : > { %2479 = vrcp.f32 %v1096_v32 }
 0x5f2   : > { %v1152_v33 = vpop.permute.xlu0 %1151 }
 0x5f3   : > { %v1157_v43 = vsel %vm908_vm3, %v1152_v33, 0 }
 0x5f5   : > { %v2478_v37 = vpop.eup %2477 }
 0x5f6   : > { %v1150_v36 = vpop.permute.xlu0 %1149  ;;  %v1099_v39 = vmul.f32 %v2478_v37, %v2474_v25 }
 0x5f9   : > { %v2480_v38 = vpop.eup %2479 }
 0x5fa   : > { %v1100_v40 = vmul.f32 %v2480_v38, %v2476_v29  ;;  %v1271_v41 = vpop.permute.xlu0 %1270 }
 0x5fb   : > { %2288 = vmatmul.mubr.msk.bf16.vlgmr.msra.gmra.mrb[4].mxu0 %vm908_vm3, %v1271_v41 }
 0x5fc   : > { %v1101_v42 = vpack.c.bf16 %v1100_v40, %v1099_v39  ;;  %2301 = vmatprep.mubr.msk.bf16.mxu0 %vm2614_vm2, %v2613_v3 }
 0x5fe   : > { %2270 = vmatmul.mubr.msk.bf16.vlgmr.msra.gmra.mrb[12].mxu1 %vm956_vm4, %v1101_v42  ;;  %v2457_v42 = vld [vmem:[%s2825_s18] sm:$0xff]  }
 0x5ff   : > { %2274 = vmatpush3.bf16.xpose.msra.mxu1 %v1157_v43  ;;  %2275 = vmatprep.mubr.msk.bf16.mxu1 %vm2614_vm2, %v2613_v3  ;;  %v1448_v43 = vsel %vm838_vm1, %v2457_v42, 0 }
 0x600   : > { %2279 = vmatprep.subr.bf16.mxu1 %v2613_v3  ;;  %2298 = vmatpush3.bf16.xpose.msra.mxu0 %v1448_v43 }
 0x601   : > { %2299 = vmatprep.subr.bf16.mxu0 %v2613_v3 }
 0x606   : > { %2276 = vmatmul.mubr.msk.bf16.vlgmr.msra.gmra.mrb[16].mxu1 %vm908_vm3, %v1150_v36 }
 0x607   : > { %2281 = vmatprep.mubr.msk.bf16.mxu1 %vm2614_vm2, %v2613_v3 }
 0x6ce   : > { %v1314_v28 = vpop.f32.mrb[4].mxu0 }
 0x6cf   : > { %v2289_v44 = vpop.f32.mrb[5].mxu0  ;;  %v1315_v56 = vadd.f32 %v1314_v28, %v2929_v34  ;;  %v2458_v28 = vld [vmem:[%s2825_s18 + $0x8] sm:$0xff]  }
 0x6d0   : > { %v1317_v45 = vpop.f32.mrb[6].mxu0  ;;  %v1451_v44 = vsel %vm838_vm1, %v2458_v28, 0 }
 0x6d1   : > { %v1142_v46 = vpop.f32.mrb[12].mxu1  ;;  %v2290_v47 = vpop.f32.mrb[7].mxu0  ;;  %v1318_v61 = vadd.f32 %v1317_v45, %v2931_v35  ;;  %v1321_v62 = vsel %vm956_vm4, %v1315_v56, -inf  ;;  %2300 = vmatpush3.bf16.xpose.msra.mxu0 %v1451_v44  ;;  %v2155_v44 = vld [vmem:[%s3266_s13] ss:$0 sm:$0xff] }
 0x6d2   : > { %v2271_v48 = vpop.f32.mrb[13].mxu1  ;;  %2317 = vmatprep.subr.bf16.mxu0 %v2613_v3 }
 0x6d3   : > { %v1145_v49 = vpop.f32.mrb[14].mxu1  ;;  %v1324_v63 = vsel %vm956_vm4, %v1318_v61, -inf }
 0x6d4   : > { %v2436_v50 = vpack.i.bf16 %v1145_v49, %v1142_v46  ;;  %v2272_v51 = vpop.f32.mrb[15].mxu1 }
 0x6d9   : > { %v1193_v52 = vpop.f32.mrb[16].mxu1 }
 0x6da   : > { %v1194_v53 = vadd.f32 %v1193_v52, %v2929_v34  ;;  %v2277_v54 = vpop.f32.mrb[17].mxu1 }
 0x6db   : > { %v1196_v55 = vpop.f32.mrb[18].mxu1 }
 0x6dc   : > { %v1197_v57 = vadd.f32 %v1196_v55, %v2931_v35  ;;  %v2278_v58 = vpop.f32.mrb[19].mxu1  ;;  %v1200_v59 = vsel %vm956_vm4, %v1194_v53, -inf }
 0x6dd   : > { %1201 = vmax.xlane.f32.xlu0 %v1200_v59 }
 0x6de   : > { %v1203_v60 = vsel %vm956_vm4, %v1197_v57, -inf }
 0x6df   : > { %1204 = vmax.xlane.f32.xlu1 %v1203_v60 }
 0x6e1   : > { %1322 = vmax.xlane.f32.xlu0 %v1321_v62 }
 0x6e5   : > { %1325 = vmax.xlane.f32.xlu0 %v1324_v63 }
 0x76a   : > { %v1202_v0 = vpop.xlane.xlu0 %1201 }
 0x76b   : > { %v1206_v2 = vsub.f32 %v1194_v53, %v1202_v0 }
 0x76c   : > { %v1205_v34 = vpop.xlane.xlu1 %1204 }
 0x76d   : > { %v1208_v5 = vmul.f32 1.442695, %v1206_v2  ;;  %v1207_v6 = vsub.f32 %v1197_v57, %v1205_v34 }
 0x76e   : > { %v1323_v7 = vpop.xlane.xlu0 %1322 }
 0x76f   : > { %2481 = vpow2.f32 %v1208_v5  ;;  %v1210_v8 = vmul.f32 1.442695, %v1207_v6  ;;  %v1327_v9 = vsub.f32 %v1315_v56, %v1323_v7 }
 0x771   : > { %2483 = vpow2.f32 %v1210_v8  ;;  %v1329_v10 = vmul.f32 1.442695, %v1327_v9 }
 0x772   : > { %v1326_v11 = vpop.xlane.xlu0 %1325 }
 0x773   : > { %2485 = vpow2.f32 %v1329_v10  ;;  %v1328_v35 = vsub.f32 %v1318_v61, %v1326_v11 }
 0x775   : > { %v1331_v12 = vmul.f32 1.442695, %v1328_v35 }
 0x777   : > { %2487 = vpow2.f32 %v1331_v12 }
 0x779   : > { %v2482_v13 = vpop.eup %2481 }
 0x77a   : > { %v1212_v14 = vsel %vm956_vm4, %v2482_v13, 0.0 }
 0x77b   : > { %v2484_v17 = vpop.eup %2483  ;;  %1213 = vadd.xlane.f32.xlu0 %v1212_v14 }
 0x77c   : > { %v1215_v20 = vsel %vm956_vm4, %v2484_v17, 0.0 }
 0x77d   : > { %v2486_v18 = vpop.eup %2485 }
 0x77e   : > { %v1333_v19 = vsel %vm956_vm4, %v2486_v18, 0.0 }
 0x77f   : > { %1334 = vadd.xlane.f32.xlu1 %v1333_v19  ;;  %1216 = vadd.xlane.f32.xlu0 %v1215_v20  ;;  %v2459_v19 = vld [vmem:[%s2843_s3] sm:$0xff]  }
 0x780   : > { %v1581_v20 = vsel %vm838_vm1, %v2459_v19, 0 }
 0x781   : > { %v2488_v21 = vpop.eup %2487 }
 0x782   : > { %v1336_v22 = vsel %vm956_vm4, %v2488_v21, 0.0 }
 0x783   : > { %1337 = vadd.xlane.f32.xlu0 %v1336_v22 }
 0x790   : > { %1223 = vrot.lane.b32.xlu1 %v2907_v27, %s2624_s25 }
 0x794   : > { %2437 = vrot.lane.b32.xlu1 %v2436_v50, %s2625_s0 }
 0x799   : > { %1344 = vrot.lane.b32.xlu0 %v2907_v27, %s2626_s26 }
 0x808   : > { %v1214_v23 = vpop.xlane.xlu0 %1213 }
 0x809   : > { %2489 = vrcp.f32 %v1214_v23 }
 0x80c   : > { %v1335_v24 = vpop.xlane.xlu1 %1334  ;;  %v1217_v25 = vpop.xlane.xlu0 %1216 }
 0x80d   : > { %2491 = vrcp.f32 %v1217_v25 }
 0x810   : > { %v1224_v26 = vpop.permute.xlu1 %1223  ;;  %v1338_v29 = vpop.xlane.xlu0 %1337 }
 0x811   : > { %2280 = vmatpush3.bf16.msra.mxu1 %v1224_v26  ;;  %2493 = vrcp.f32 %v1338_v29 }
 0x812   : > { %2291 = vmatprep.subr.bf16.mxu1 %v2613_v3  ;;  %2495 = vrcp.f32 %v1335_v24 }
 0x813   : > { %v2490_v30 = vpop.eup %2489 }
 0x814   : > { %v1220_v32 = vmul.f32 %v2490_v30, %v2482_v13  ;;  %v1345_v27 = vpop.permute.xlu0 %1344  ;;  %v2438_v55 = vpop.permute.xlu1 %2437 }
 0x815   : > { %v2440_v57 = vunpack.i.h.bf16 %v2438_v55  ;;  %v2439_v58 = vunpack.i.l.bf16 %v2438_v55 }
 0x817   : > { %v2492_v31 = vpop.eup %2491  ;;  %v1416_v62 = vsel %vm908_vm3, %v2953_v4, %v2440_v57  ;;  %v1415_v63 = vsel %vm908_vm3, %v2951_v1, %v2439_v58  ;;  %v2151_v1 = vld [vmem:[%s3264_s17] ss:$0 sm:$0xff] }
 0x818   : > { %v1221_v33 = vmul.f32 %v2492_v31, %v2484_v17  ;;  %v2460_v31 = vld [vmem:[%s2843_s3 + $0x8] sm:$0xff]   ;;  %v2157_v58 = vld [vmem:[%s750_s5] ss:$0 sm:$0xff] }
 0x81a   : > { %v1222_v36 = vpack.c.bf16 %v1221_v33, %v1220_v32  ;;  %v1584_v32 = vsel %vm838_vm1, %v2460_v31, 0  ;;  %v2461_v33 = vld [vmem:[%s2843_s3 + $0x10] sm:$0xff]  }
 0x81b   : > { %v2494_v37 = vpop.eup %2493 }
 0x81c   : > { %2282 = vmatmul.mubr.msk.bf16.vlgmr.msra.gmra.mrb[20].mxu1 %vm956_vm4, %v1222_v36  ;;  %v2496_v38 = vpop.eup %2495  ;;  %v1342_v39 = vmul.f32 %v2494_v37, %v2488_v21  ;;  %v1587_v36 = vsel %vm838_vm1, %v2461_v33, 0  ;;  %v2462_v37 = vld [vmem:[%s2843_s3 + $0x18] sm:$0xff]  }
 0x81d   : > { %2292 = vmatpush3.bf16.msra.mxu1 %v1345_v27  ;;  %2293 = vmatprep.mubr.msk.bf16.mxu1 %vm2614_vm2, %v2613_v3  ;;  %v1341_v40 = vmul.f32 %v2496_v38, %v2486_v18  ;;  %v1590_v27 = vsel %vm838_vm1, %v2462_v37, 0 }
 0x81e   : > { %2305 = vmatprep.subr.bf16.mxu1 %v2613_v3 }
 0x81f   : > { %v1343_v41 = vpack.c.bf16 %v1342_v39, %v1341_v40 }
 0x824   : > { %2294 = vmatmul.mubr.msk.bf16.vlgmr.msra.gmra.mrb[24].mxu1 %vm956_vm4, %v1343_v41 }
 0x825   : > { %2313 = vmatprep.mubr.msk.bf16.mxu1 %vm2614_vm2, %v2613_v3 }
 0x826   : > { %2306 = vmatpush3.bf16.xpose.msra.mxu1 %v1581_v20 }
 0x827   : > { %2307 = vmatprep.subr.bf16.mxu1 %v2613_v3 }
 0x82e   : > { %2308 = vmatpush3.bf16.xpose.msra.mxu1 %v1584_v32 }
 0x82f   : > { %2309 = vmatprep.subr.bf16.mxu1 %v2613_v3 }
 0x836   : > { %2310 = vmatpush3.bf16.xpose.msra.mxu1 %v1587_v36 }
 0x837   : > { %2311 = vmatprep.subr.bf16.mxu1 %v2613_v3 }
 0x83e   : > { %2312 = vmatpush3.bf16.xpose.msra.mxu1 %v1590_v27 }
 0x8ef   : > { %v1263_v45 = vpop.f32.mrb[20].mxu1 }
 0x8f0   : > { %v2283_v46 = vpop.f32.mrb[21].mxu1 }
 0x8f1   : > { %v1266_v47 = vpop.f32.mrb[22].mxu1 }
 0x8f2   : > { %v2441_v48 = vpack.i.bf16 %v1266_v47, %v1263_v45  ;;  %v2284_v49 = vpop.f32.mrb[23].mxu1 }
 0x8f3   : > { %v2156_v49 = vld [vmem:[%s3268_s14] ss:$0 sm:$0xff] }
 0x8f4   : > { %2442 = vrot.lane.b32.xlu1 %v2441_v48, %s2627_s22  ;;  %s3273_s22 = sld [smem:[#allocation30_spill]] (!%p2169_p1) }
 0x8f7   : > { %v1384_v50 = vpop.f32.mrb[24].mxu1 }
 0x8f8   : > { %v2295_v51 = vpop.f32.mrb[25].mxu1 }
 0x8f9   : > { %v1387_v52 = vpop.f32.mrb[26].mxu1 }
 0x8fa   : > { %v2446_v53 = vpack.i.bf16 %v1387_v52, %v1384_v50  ;;  %v2296_v54 = vpop.f32.mrb[27].mxu1 }
 0x8fb   : > { %v2463_v54 = vld [vmem:[%s2852_s1] sm:$0xff]  }
 0x8fc   : > { %2447 = vrot.lane.b32.xlu0 %v2446_v53, %s2628_s23  ;;  %v1670_v55 = vsel %vm1665_vm6, %v2463_v54, 0  ;;  %v2511_v54 = vld [vmem:[%s3272_s15 + $0x10] sm:$0xff] (!%p2169_p1)  }
 0x966   : > { %v2443_v56 = vpop.permute.xlu1 %2442 }
 0x967   : > { %v2445_v59 = vunpack.i.h.bf16 %v2443_v56  ;;  %v2444_v60 = vunpack.i.l.bf16 %v2443_v56  ;;  %v2464_v56 = vld [vmem:[%s2852_s1 + $0x8] sm:$0xff]  }
 0x968   : > { %v1673_v57 = vsel %vm1665_vm6, %v2464_v56, 0  ;;  %v2512_v56 = vld [vmem:[%s3272_s15 + $0x18] sm:$0xff] (!%p2169_p1)  }
 0x969   : > { %v1418_v34 = vsel %vm956_vm4, %v1416_v62, %v2445_v59  ;;  %v1417_v5 = vsel %vm956_vm4, %v1415_v63, %v2444_v60 }
 0x96e   : > { %v2448_v61 = vpop.permute.xlu0 %2447 }
 0x96f   : > { %v2450_v0 = vunpack.i.h.bf16 %v2448_v61  ;;  %v2449_v2 = vunpack.i.l.bf16 %v2448_v61 }
 0x971   : > { %v1421_v6 = vsel %vm1419_vm5, %v1418_v34, %v2450_v0  ;;  %v1420_v7 = vsel %vm1419_vm5, %v1417_v5, %v2449_v2 }
 0x972   : > { %v1422_v8 = vpack.c.bf16 %v1421_v6, %v1420_v7 }
 0x974   : > { %2302 = vmatmul.mubr.msk.bf16.vlgmr.msra.gmra.mrb[8].mxu0 %vm838_vm1, %v1422_v8 }
 0x975   : > { %2321 = vmatprep.mubr.msk.bf16.mxu0 %vm2614_vm2, %v2613_v3  ;;  %2318 = vmatpush3.bf16.xpose.msra.mxu0 %v1670_v55  ;;  %v1842_v55 = vsel (!%p2169_p1), %vm838_vm1, %v2511_v54, 0 }
 0x976   : > { %2319 = vmatprep.subr.bf16.mxu0 %v2613_v3 }
 0x97d   : > { %2320 = vmatpush3.bf16.xpose.msra.mxu0 %v1673_v57  ;;  %v1845_v57 = vsel (!%p2169_p1), %vm838_vm1, %v2512_v56, 0 }
 0xa47   : > { %v1487_v4 = vpop.f32.mrb[8].mxu0 }
 0xa48   : > { %v1488_v9 = vadd.f32 %v2151_v1, %v1487_v4  ;;  %v2303_v10 = vpop.f32.mrb[9].mxu0 }
 0xa49   : > { %v1490_v11 = vpop.f32.mrb[10].mxu0 }
 0xa4a   : > { %v1491_v35 = vadd.f32 %v2151_v1, %v1490_v11  ;;  %v2304_v12 = vpop.f32.mrb[11].mxu0  ;;  %v1494_v13 = vadd.f32 %v1488_v9, %v2892_v15  ;;  %v2163_v11 = vld [vmem:[%s758_s28] ss:$0 sm:$0xff] }
 0xa4c   : > { %v1498_v14 = vsel %vm838_vm1, %v1494_v13, 0.0  ;;  %v1495_v17 = vadd.f32 %v1491_v35, %v2894_v16 }
 0xa4d   : > { %1499 = vadd.xlane.f32.xlu1 %v1498_v14 }
 0xa4e   : > { %v1501_v18 = vsel %vm838_vm1, %v1495_v17, 0.0 }
 0xa4f   : > { %1502 = vadd.xlane.f32.xlu0 %v1501_v18 }
 0xada   : > { %v1500_v21 = vpop.xlane.xlu1 %1499 }
 0xadb   : > { %v1505_v22 = vmul.f32 0.03125, %v1500_v21 }
 0xadc   : > { %v1503_v23 = vpop.xlane.xlu0 %1502 }
 0xadd   : > { %v1507_v15 = vsub.f32 %v1494_v13, %v1505_v22  ;;  %v1506_v24 = vmul.f32 0.03125, %v1503_v23 }
 0xadf   : > { %v1508_v25 = vsub.f32 %v1495_v17, %v1506_v24  ;;  %v1509_v16 = vmul.f32 %v1507_v15, %v1507_v15 }
 0xae1   : > { %v1511_v26 = vsel %vm838_vm1, %v1509_v16, 0.0  ;;  %v1510_v29 = vmul.f32 %v1508_v25, %v1508_v25 }
 0xae2   : > { %1512 = vadd.xlane.f32.xlu0 %v1511_v26 }
 0xae3   : > { %v1514_v30 = vsel %vm838_vm1, %v1510_v29, 0.0 }
 0xae4   : > { %1515 = vadd.xlane.f32.xlu1 %v1514_v30 }
 0xb6f   : > { %v1513_v38 = vpop.xlane.xlu0 %1512 }
 0xb70   : > { %v1517_v39 = vmul.f32 0.03125, %v1513_v38 }
 0xb71   : > { %v1516_v40 = vpop.xlane.xlu1 %1515 }
 0xb72   : > { %v1519_v41 = vadd.f32 1e-05, %v1517_v39  ;;  %v1518_v42 = vmul.f32 0.03125, %v1516_v40 }
 0xb74   : > { %2497 = vrsqrt.f32 %v1519_v41  ;;  %v1520_v43 = vadd.f32 1e-05, %v1518_v42  ;;  %v2167_v41 = vld [vmem:[%s761_s8] ss:$0 sm:$0xff] }
 0xb76   : > { %2499 = vrsqrt.f32 %v1520_v43 }
 0xb7e   : > { %v2498_v28 = vpop.eup %2497 }
 0xb7f   : > { %v1523_v45 = vmul.f32 %v2498_v28, %v1507_v15  ;;  %v2168_v28 = vld [vmem:[%s764_s9] ss:$0 sm:$0xff] }
 0xb80   : > { %v2500_v46 = vpop.eup %2499 }
 0xb81   : > { %v1531_v47 = vmul.f32 %v2155_v44, %v1523_v45  ;;  %v1524_v48 = vmul.f32 %v2500_v46, %v1508_v25 }
 0xb83   : > { %v1532_v50 = vmul.f32 %v2155_v44, %v1524_v48  ;;  %v1539_v51 = vadd.f32 %v2156_v49, %v1531_v47 }
 0xb85   : > { %v1540_v52 = vadd.f32 %v2156_v49, %v1532_v50  ;;  %v2509_v49 = vld [vmem:[%s3272_s15] sm:$0xff] (!%p2169_p1)   ;;  %v2629_v50 = vmov (!%p2169_p1), 0.0  }
 0xb86   : > { %2325 = vmatprep.subr.bf16.mxu0 (!%p2169_p1), %v2629_v50 }
 0xb87   : > { %v1541_v53 = vpack.c.bf16 %v1540_v52, %v1539_v51 }
 0xb89   : > { %2314 = vmatmul.mubr.msk.bf16.vlgmr.msra.gmra.mrb[28].mxu1 %vm838_vm1, %v1541_v53 }
 0xc5c   : > { %v1626_v59 = vpop.f32.mrb[28].mxu1 }
 0xc5d   : > { %v1627_v60 = vadd.f32 %v2157_v58, %v1626_v59  ;;  %v2315_v61 = vpop.f32.mrb[29].mxu1 }
 0xc5e   : > { %v1629_v62 = vpop.f32.mrb[30].mxu1 }
 0xc5f   : > { %v1635_v63 = vmul.f32 0.70710677, %v1627_v60  ;;  %v1630_v0 = vadd.f32 %v2157_v58, %v1629_v62  ;;  %v2316_v2 = vpop.f32.mrb[31].mxu1  ;;  %v1633_v7 = vmul.f32 0.5, %v1627_v60  ;;  %v2513_v58 = vld [vmem:[%s3272_s15 + $0x20] sm:$0xff] (!%p2169_p1)   ;;  %v2514_v60 = vld [vmem:[%s3272_s15 + $0x28] sm:$0xff] (!%p2169_p1)  }
 0xc60   : > { %v1848_v59 = vsel (!%p2169_p1), %vm838_vm1, %v2513_v58, 0  ;;  %v1851_v61 = vsel (!%p2169_p1), %vm838_vm1, %v2514_v60, 0  ;;  %v2515_v62 = vld [vmem:[%s3272_s15 + $0x30] sm:$0xff] (!%p2169_p1)  }
 0xc61   : > { %2501 = verf.f32 %v1635_v63  ;;  %v1636_v34 = vmul.f32 0.70710677, %v1630_v0  ;;  %v1634_v8 = vmul.f32 0.5, %v1630_v0  ;;  %v1854_v63 = vsel (!%p2169_p1), %vm838_vm1, %v2515_v62, 0  ;;  %v2516_v0 = vld [vmem:[%s3272_s15 + $0x38] sm:$0xff] (!%p2169_p1)  }
 0xc62   : > { %v1857_v2 = vsel (!%p2169_p1), %vm838_vm1, %v2516_v0, 0 }
 0xc63   : > { %2503 = verf.f32 %v1636_v34 }
 0xc6b   : > { %v2502_v3 = vpop.eup %2501 }
 0xc6c   : > { %v1639_v5 = vadd.f32 1.0, %v2502_v3  ;;  %v2170_v3 = vld [vmem:[%s3273_s22] ss:$0 sm:$0xff] (!%p2169_p1) }
 0xc6d   : > { %v2504_v6 = vpop.eup %2503 }
 0xc6e   : > { %v1640_v1 = vadd.f32 1.0, %v2504_v6  ;;  %v1641_v4 = vmul.f32 %v1639_v5, %v1633_v7 }
 0xc70   : > { %v1642_v9 = vmul.f32 %v1640_v1, %v1634_v8 }
 0xc72   : > { %v1643_v10 = vpack.c.bf16 %v1642_v9, %v1641_v4 }
 0xc74   : > { %2322 = vmatmul.mubr.msk.bf16.vlgmr.msra.gmra.mrb[12].mxu0 %vm1665_vm6, %v1643_v10 }
 0xc75   : > { %2341 = vmatprep.mubr.msk.bf16.mxu0 (!%p2169_p1), %vm2630_vm7, %v2629_v50 }
 0xd47   : > { %v1709_v35 = vpop.f32.mrb[12].mxu0 }
 0xd48   : > { %v1710_v12 = vadd.f32 %v2163_v11, %v1709_v35  ;;  %v2323_v13 = vpop.f32.mrb[13].mxu0 }
 0xd49   : > { %v1712_v14 = vpop.f32.mrb[14].mxu0 }
 0xd4a   : > { %v1713_v17 = vadd.f32 %v2163_v11, %v1712_v14  ;;  %v2324_v18 = vpop.f32.mrb[15].mxu0  ;;  %v1716_v19 = vadd.f32 %v1710_v12, %v1539_v51  ;;  %v1836_v51 = vsel (!%p2169_p1), %vm838_vm1, %v2509_v49, 0 }
 0xd4b   : > { %2326 = vmatpush3.bf16.xpose.msra.mxu0 (!%p2169_p1), %v1836_v51 }
 0xd4c   : > { %v1720_v20 = vsel %vm838_vm1, %v1716_v19, 0.0  ;;  %v1717_v21 = vadd.f32 %v1713_v17, %v1540_v52  ;;  %2327 = vmatprep.subr.bf16.mxu0 (!%p2169_p1), %v2629_v50  ;;  %v2510_v52 = vld [vmem:[%s3272_s15 + $0x8] sm:$0xff] (!%p2169_p1)  }
 0xd4d   : > { %1721 = vadd.xlane.f32.xlu0 %v1720_v20  ;;  %v1839_v53 = vsel (!%p2169_p1), %vm838_vm1, %v2510_v52, 0 }
 0xd4e   : > { %v1723_v22 = vsel %vm838_vm1, %v1717_v21, 0.0 }
 0xd4f   : > { %1724 = vadd.xlane.f32.xlu1 %v1723_v22 }
 0xd53   : > { %2328 = vmatpush3.bf16.xpose.msra.mxu0 (!%p2169_p1), %v1839_v53 }
 0xd54   : > { %2329 = vmatprep.subr.bf16.mxu0 (!%p2169_p1), %v2629_v50 }
 0xd5b   : > { %2330 = vmatpush3.bf16.xpose.msra.mxu0 (!%p2169_p1), %v1842_v55 }
 0xd5c   : > { %2331 = vmatprep.subr.bf16.mxu0 (!%p2169_p1), %v2629_v50 }
 0xd63   : > { %2332 = vmatpush3.bf16.xpose.msra.mxu0 (!%p2169_p1), %v1845_v57 }
 0xd64   : > { %2333 = vmatprep.subr.bf16.mxu0 (!%p2169_p1), %v2629_v50 }
 0xd6b   : > { %2334 = vmatpush3.bf16.xpose.msra.mxu0 (!%p2169_p1), %v1848_v59 }
 0xd6c   : > { %2335 = vmatprep.subr.bf16.mxu0 (!%p2169_p1), %v2629_v50 }
 0xd73   : > { %2336 = vmatpush3.bf16.xpose.msra.mxu0 (!%p2169_p1), %v1851_v61 }
 0xd74   : > { %2337 = vmatprep.subr.bf16.mxu0 (!%p2169_p1), %v2629_v50 }
 0xd7b   : > { %2338 = vmatpush3.bf16.xpose.msra.mxu0 (!%p2169_p1), %v1854_v63 }
 0xd7c   : > { %2339 = vmatprep.subr.bf16.mxu0 (!%p2169_p1), %v2629_v50 }
 0xd83   : > { %2340 = vmatpush3.bf16.xpose.msra.mxu0 (!%p2169_p1), %v1857_v2 }
 0xdda   : > { %v1722_v23 = vpop.xlane.xlu0 %1721 }
 0xddb   : > { %v1726_v15 = vmul.f32 0.03125, %v1722_v23 }
 0xddc   : > { %v1725_v24 = vpop.xlane.xlu1 %1724 }
 0xddd   : > { %v1728_v25 = vsub.f32 %v1716_v19, %v1726_v15  ;;  %v1727_v16 = vmul.f32 0.03125, %v1725_v24 }
 0xddf   : > { %v1729_v26 = vsub.f32 %v1717_v21, %v1727_v16  ;;  %v1730_v29 = vmul.f32 %v1728_v25, %v1728_v25 }
 0xde1   : > { %v1732_v30 = vsel %vm838_vm1, %v1730_v29, 0.0  ;;  %v1731_v31 = vmul.f32 %v1729_v26, %v1729_v26 }
 0xde2   : > { %1733 = vadd.xlane.f32.xlu0 %v1732_v30 }
 0xde3   : > { %v1735_v32 = vsel %vm838_vm1, %v1731_v31, 0.0 }
 0xde4   : > { %1736 = vadd.xlane.f32.xlu1 %v1735_v32 }
 0xe6f   : > { %v1734_v33 = vpop.xlane.xlu0 %1733 }
 0xe70   : > { %v1738_v36 = vmul.f32 0.03125, %v1734_v33 }
 0xe71   : > { %v1737_v37 = vpop.xlane.xlu1 %1736 }
 0xe72   : > { %v1740_v27 = vadd.f32 1e-05, %v1738_v36  ;;  %v1739_v38 = vmul.f32 0.03125, %v1737_v37 }
 0xe74   : > { %2505 = vrsqrt.f32 %v1740_v27  ;;  %v1741_v39 = vadd.f32 1e-05, %v1739_v38 }
 0xe76   : > { %2507 = vrsqrt.f32 %v1741_v39 }
 0xe7e   : > { %v2506_v40 = vpop.eup %2505 }
 0xe7f   : > { %v1744_v42 = vmul.f32 %v2506_v40, %v1728_v25 }
 0xe80   : > { %v2508_v43 = vpop.eup %2507 }
 0xe81   : > { %v1752_v44 = vmul.f32 %v2167_v41, %v1744_v42  ;;  %v1745_v45 = vmul.f32 %v2508_v43, %v1729_v26  ;;  %1767 = sbr.rel (%p2169_p1) target bundleno = 3938 (0xf62), region = 96 }
 0xe83   : > { %v1760_v46 = vadd.f32 %v2168_v28, %v1752_v44  ;;  %v1753_v47 = vmul.f32 %v2167_v41, %v1745_v45 }
 0xe85   : > { %1762 = vst.msk [vmem:[#allocation2] sm:$0xff] %vm838_vm1, %v1760_v46  ;;  %v1761_v48 = vadd.f32 %v2168_v28, %v1753_v47 }
 0xe87   : > { %1763 = vst.msk [vmem:[#allocation2 + $0x8] sm:$0xff] %vm838_vm1, %v1761_v48  ;;  %v1768_v34 = vpack.c.bf16 (!%p2169_p1), %v1761_v48, %v1760_v46 }
 0xe89   : > { %2342 = vmatmul.mubr.msk.bf16.vlgmr.msra.gmra.mrb[0].mxu0 %vm838_vm1, %v1768_v34 }
 0xf5c   : > { %v1893_v5 = vpop.f32.mrb[0].mxu0 }
 0xf5d   : > { %v1894_v6 = vadd.f32 %v2170_v3, %v1893_v5  ;;  %v2343_v7 = vpop.f32.mrb[1].mxu0 }
 0xf5e   : > { %v1896_v8 = vpop.f32.mrb[2].mxu0 }
 0xf5f   : > { %1900 = vst [vmem:[%s2866_s7] sm:$0xff] %v1894_v6  ;;  %v1897_v1 = vadd.f32 %v2170_v3, %v1896_v8  ;;  %v2344_v4 = vpop.f32.mrb[3].mxu0 }
 0xf61   : > { %1901 = vst [vmem:[%s2866_s7 + $0x8] sm:$0xff] %v1897_v1 }
 0xf62 PF: > { %s3274_s23 = sld [smem:[#allocation10_spill]]  ;;  %s3275_s18 = sld [smem:[#allocation7_spill]] }
 0xf63   : > { %s3277_s20 = sld [smem:[#allocation31_spill]]  ;;  %s1916_s27 = sshll.u32 %s2866_s7, 4  ;;  %s3129_s27 = int_to_ptr.vmem [resolvable:$true] %s1916_s27 }
 0xf64   : > { %s2517_s2 = scalar_lea.vmem %s3129_s27, 256  ;;  %s2631_s16 = smov [#allocation3]  }
 0xf65   : > { %p2518_p2 = scmp.ne.s32.totalorder %s3129_s27, %s2517_s2  ;;  %s2521_s14 = sshll.u32 %s2631_s16, 4  ;;  %s2522_s14 = int_to_ptr.vmem [resolvable:$false] %s2521_s14 }
 0xf66   : > { %s2523_s29 = scalar_lea.vmem %s2522_s14, 512  ;;  %p2524_p6 = scmp.lt.s32.totalorder %s3129_s27, %s2522_s14 }
 0xf67   : > { %p2519_p4 = pnand %p2518_p2, %p2772_p3  ;;  %p2525_p7 = scmp.lt.s32.totalorder %s2523_s29, %s2517_s2 }
 0xf68   : > { %s2189_s8 = sshll.u32 %s3274_s23, 8  ;;  %s3278_s13 = sand.u32 1, %s3275_s18  }
 0xf69   : > { %s3126_s24 = scalar_lea.hbm %s3277_s20, %s2189_s8  ;;  %s3133_s3 = scalar_lea.sflag [#allocation4], %s3278_s13 }
 0xf6a   : > { %p2520_p5 = pneg %p2519_p4  ;;  %p2526_p8 = por %p2525_p7, %p2524_p6 }
 0xf6c   : > { %p2527_p10 = pnand %p2526_p8, %p2520_p5 }
 0xf6e   : > { %2530 = shalt.err (!%p2527_p10)
}
 0xf6f   : > { %s2531_s7 = scalar_lea.hbm %s3126_s24, 256  ;;  %s2535_s1 = scalar_lea.hbm %s3277_s20, 512 }
 0xf70   : > { %p2532_p11 = scmp.ne.s32.totalorder %s3126_s24, %s2531_s7  ;;  %p2536_p0 = scmp.lt.u32.totalorder %s3126_s24, %s3277_s20 }
 0xf71   : > { %p2537_p1 = scmp.lt.u32.totalorder %s2535_s1, %s2531_s7  ;;  %p2539_p4 = scmp.lt.u32.totalorder %s2531_s7, %s3126_s24 }
 0xf72   : > { %p2533_p12 = pnand %p2532_p11, %p2772_p3 }
 0xf73   : > { %p2538_p2 = por %p2537_p1, %p2536_p0 }
 0xf74   : > { %p2534_p13 = pneg %p2533_p12 }
 0xf75   : > { %p2540_p5 = por %p2539_p4, %p2538_p2 }
 0xf77   : > { %p2541_p6 = pnand %p2540_p5, %p2534_p13 }
 0xf79   : > { %2544 = shalt.err (!%p2541_p6)
}
 0xf7a   : > { %s2632_s26 = smov 128  }
 0xf7b   : > { %2346 = dma.vmem_to_hbm [thread:$0]  (%p2772_p3), %s3129_s27, 256, %s3126_s24, %s3133_s3, %s2632_s26, %s2632_s26, %s2625_s0  }
 0xf7c PF: > { %s3279_s22 = sld [smem:[#allocation13_spill]]  ;;  %s3280_s23 = sld [smem:[#allocation6_spill]] }
 0xf82   : > { %p2352_p7 = scmp.ge.s32.totalorder %s3279_s22, 2  ;;  %s1931_s8 = sand.u32 1, %s3280_s23  }
 0xf83   : > { %s1932_s17 = scalar_lea.sflag [#allocation4], %s1931_s8 }
 0xf84   : > { %p2349_p8 = pnand %p2352_p7, %p2782_p9 }
 0xf86   : > { %2578 = dma.done.wait (!%p2349_p8), %s1932_s17, 256  }
 0xf87   : > { %2580 = vsyncadd (!%p2349_p8), %s1932_s17, 4294967040  ;;  %s30_s30 = sadd.s32 1, %s3279_s22   ;;  %s3282_s24 = sld [smem:[#allocation7_spill]] }
 0xf88   : > { %p27_p10 = scmp.ge.s32.totalorder %s30_s30, 6   ;;  %s3283_s25 = sld [smem:[#allocation8_spill]] }
 0xf89   : > { %s3284_s26 = sld [smem:[#allocation18_spill]]  ;;  %s3285_s27 = sld [smem:[#allocation11_spill]] }
 0xf8a   : > { %s3286_s28 = sld [smem:[#allocation12_spill]]  ;;  %s3287_s29 = sld [smem:[#allocation14_spill]] }
 0xf8b   : > { %s3288_s0 = sld [smem:[#allocation16_spill]]  ;;  %29 = sbr.rel (!%p27_p10) target bundleno = 19 (0x13), region = 170 }
 0xf92   :  { %1937 = vsyncpa [#allocation4], 1 }
 0xf93   :  { %1939 = vsyncpa [#allocation4 + $0x1], 1 }

</bundles_post_ra>
